<compile_context>
chip_gen: v6e
topology: v6e:2x2x1
jax: 0.10.0
libtpu: 0.0.40
codegen_flags: <defaults>
</compile_context>

<pallas_src>
import jax
import jax.numpy as jnp
from jax import lax
from jax.experimental import pallas as pl
from jax.experimental.pallas import tpu as pltpu

# CX_loss calls create_using_L2(..., sigma=1.0).  exp((B - rel)/sigma) = exp(B/sigma)*exp(-rel/sigma)
# and the exp(B/sigma) constant cancels in the per-column normalization, but the 1/sigma
# scale would NOT cancel — if sigma ever becomes configurable, use exp(-rel/sigma) below.
SIGMA = 1.0
B_CONST = 1.0
EPS = 1e-5
BIG = 1e30          # "excluded" distance for padded template rows (finite: safe under *1/eps and bf16)
TILE_I_CAP = 2048   # absolute cap on the I-pixel (lane) tile


def _round_up(v, m):
    return ((v + m - 1) // m) * m


def _vmem_budget_bytes():
    """~3/4 of device VMEM: ~48 MiB on v7x (64 MiB/TC), ~96 MiB on v5e/v6e (128 MiB)."""
    cap = None
    try:
        cap = int(pltpu.get_tpu_info().vmem_capacity_bytes)
    except Exception:
        cap = None
    if not cap or cap <= 0:
        cap = 64 * 1024 * 1024          # conservative default (v7x-sized)
    return (3 * cap) // 4


def _supports_bf16_eup():
    """bf16 transcendentals exist on v6e / v7x; v5e and older must stay f32."""
    try:
        kind = jax.devices()[0].device_kind.lower()
    except Exception:
        return False
    return ("v6" in kind) or ("v7" in kind) or ("trillium" in kind)


def _choose_tiling(P, vmem_budget, tile_cap=TILE_I_CAP):
    """Pick (P_T_pad, P_I_pad, tile_i) from a per-generation VMEM budget.

    VMEM consumers: ~4 live (P_T, tile_i) f32 temporaries (A/raw, w, cs, slack),
    the lane-padded (P_T,1) rT scratch and (P_T,128) rowmax scratch (~512 B/row each),
    the resident -2*T double buffer, and the streamed I double buffer.
    """
    pT = _round_up(P, 8)
    fixed = 512 * pT + 512 * pT + 64 * pT + (1 << 20)   # scratches + resident T + slack
    per_col = 16 * pT + 64                              # temporaries + I double buffer
    avail = max(vmem_budget - fixed, 0)
    tmax = min(tile_cap, max(128, (avail // per_col) // 128 * 128))
    p128 = _round_up(P, 128)
    if p128 <= tmax:
        tile = p128                                     # single lane-dense tile
    else:
        # largest multiple-of-128 divisor of p128 that fits the budget -> minimal padding
        tile = 128
        for cand in range(tmax, 127, -128):
            if p128 % cand == 0:
                tile = cand
                break
    # TODO(synk): for very large P even tile=128 temporaries can exceed VMEM; that needs a
    # second (template-axis) tiling level which is out of scope here.
    pI = _round_up(P, tile)
    return pT, pI, tile


def _make_cx_kernel(P, p_t_pad, tile_i, num_j, exp_in_bf16):
    pad_rows = (p_t_pad != P)
    pad_cols = (num_j * tile_i != P)
    n_chunks = tile_i // 128

    def kernel(tm2_ref, i_ref, out_ref, rt_ref, rowmax_ref):
        # tm2_ref : (1, C, P_T_pad)  resident template, already scaled by -2
        # i_ref   : (1, C, tile_i)   streamed input-pixel tile
        # rt_ref  : (P_T_pad, 1)     per-batch template squared norms (written at j == 0)
        # rowmax  : (P_T_pad, 128)   lane-dense running max over I pixels
        j = pl.program_id(1)
        Tm2 = tm2_ref[0]
        Iblk = i_ref[0]

        @pl.when(j == 0)
        def _():
            # cs >= 0 everywhere (and padded columns are masked to 0, never needing to
            # "win"), so zeros is a valid identity for the running max.
            rowmax_ref[...] = jnp.zeros_like(rowmax_ref)
            # r_T = sum_c T^2 = 0.25 * sum_c Tm2^2 — hoisted out of the I-tile loop.
            ones_col = jnp.ones((Tm2.shape[0], 1), dtype=jnp.float32)
            rt = 0.25 * lax.dot_general(
                Tm2 * Tm2, ones_col,
                dimension_numbers=(((0,), (0,)), ((), ())),
                preferred_element_type=jnp.float32)              # (P_T_pad, 1)
            if pad_rows:
                row_ids = lax.broadcasted_iota(jnp.int32, (p_t_pad, 1), 0)
                rt = jnp.where(row_ids < P, rt, BIG)             # exclude padded T rows
            rt_ref[...] = rt

        r_I = jnp.sum(Iblk * Iblk, axis=0, keepdims=True)        # (1, tile_i)

        # A[t, i] = -2 <T_t, I_i>   (the -2 lives in Tm2)
        A = lax.dot_general(Tm2, Iblk,
                            dimension_numbers=(((0,), (0,)), ((), ())),
                            preferred_element_type=jnp.float32)  # (P_T_pad, tile_i)

        raw = jnp.maximum(rt_ref[...] + A + r_I, 0.0)            # clamp(dist, min=0)

        col_min = jnp.min(raw, axis=0, keepdims=True)            # (1, tile_i)
        neg_inv_min = -pl.reciprocal(col_min + EPS)

        # exp((B - rel)/sigma) with sigma == 1: exp(B) cancels in the column
        # normalization, so exp(-rel) is mathematically identical and cheaper.
        arg = raw * neg_inv_min
        if exp_in_bf16:
            w = jnp.exp(arg.astype(jnp.bfloat16)).astype(jnp.float32)
        else:
            w = jnp.exp(arg)
        inv_sum = pl.reciprocal(jnp.sum(w, axis=0, keepdims=True))
        cs = w * inv_sum                                         # (P_T_pad, tile_i)

        if pad_cols:
            col = j * tile_i + lax.broadcasted_iota(jnp.int32, (1, tile_i), 1)
            cs = jnp.where(col < P, cs, 0.0)                     # padded I columns -> 0

        # Lane-dense running max: fold tile_i lanes down to 128 with elementwise
        # (VALU) maxes only; the cross-lane XLU reduce waits for the epilogue.
        m = cs[:, 0:128]
        for c in range(1, n_chunks):
            m = jnp.maximum(m, cs[:, c * 128:(c + 1) * 128])
        rowmax_ref[...] = jnp.maximum(rowmax_ref[...], m)

        @pl.when(j == num_j - 1)
        def _():
            row_max = jnp.max(rowmax_ref[...], axis=1, keepdims=True)   # (P_T_pad, 1)
            cs_mean = jnp.sum(row_max) / P        # padded rows contribute exactly 0
            out_ref[...] = jnp.full(out_ref.shape, cs_mean, dtype=out_ref.dtype)

    return kernel


def contextual_loss(x, y, *, exp_in_bf16=None, tile_cap=TILE_I_CAP):
    """Contextual_Loss(flag_L2_or_dotP=1).forward(x, y); x, y: NCHW float."""
    N, C, H, W = x.shape
    P = H * W
    if exp_in_bf16 is None:
        exp_in_bf16 = _supports_bf16_eup()

    budget = _vmem_budget_bytes()
    p_t_pad, p_i_pad, tile_i = _choose_tiling(P, budget, tile_cap)
    num_j = p_i_pad // tile_i

    # Free reshape NCHW -> (N, C, P): no transpose passes, pixels lane-dense.
    T = x.reshape(N, C, P).astype(jnp.float32)
    I = y.reshape(N, C, P).astype(jnp.float32)
    Tm2 = -2.0 * T                      # exact power-of-two scale; O(NCP) << O(NP^2) kernel
    if p_t_pad != P:
        Tm2 = jnp.pad(Tm2, ((0, 0), (0, 0), (0, p_t_pad - P)))
    if p_i_pad != P:
        I = jnp.pad(I, ((0, 0), (0, 0), (0, p_i_pad - P)))

    kernel = _make_cx_kernel(P, p_t_pad, tile_i, num_j, bool(exp_in_bf16))

    # TODO(synk): when N == 1 on v7x, the batch-only "parallel" axis leaves one TensorCore
    # idle; a 2-way split of the I-tile axis across cores (per-core rowmax + combine) would
    # recover it.
    cs_per_batch = pl.pallas_call(
        kernel,
        out_shape=jax.ShapeDtypeStruct((N, 1, 128), jnp.float32),
        grid_spec=pltpu.PrefetchScalarGridSpec(
            num_scalar_prefetch=0,
            grid=(N, num_j),
            in_specs=[
                pl.BlockSpec((1, C, p_t_pad), lambda n, j: (n, 0, 0)),   # resident -2*T
                pl.BlockSpec((1, C, tile_i), lambda n, j: (n, 0, j)),    # streamed I tiles
            ],
            out_specs=pl.BlockSpec((1, 1, 128), lambda n, j: (n, 0, 0)),
            scratch_shapes=[
                pltpu.VMEM((p_t_pad, 1), jnp.float32),     # r_T, written once per batch
                pltpu.VMEM((p_t_pad, 128), jnp.float32),   # lane-dense row-max accumulator
            ]),
        compiler_params=pltpu.CompilerParams(
            dimension_semantics=("parallel", "arbitrary"),
            vmem_limit_bytes=int(budget)),
    )(Tm2, I)

    CS = cs_per_batch[:, 0, 0]          # (N,)
    # CX_as_loss = 1 - CS ; CX_loss = -log(1 - CX_as_loss) = -log(CS)
    return jnp.mean(-jnp.log(CS))


def _reference(x, y):
    """Pure-JAX reference mirroring the PyTorch math exactly (sanity check)."""
    N, C, H, W = x.shape
    P = H * W
    T = jnp.transpose(x, (0, 2, 3, 1)).reshape(N, P, C).astype(jnp.float32)
    I = jnp.transpose(y, (0, 2, 3, 1)).reshape(N, P, C).astype(jnp.float32)
    r_T = jnp.sum(T * T, axis=2)
    r_I = jnp.sum(I * I, axis=2)
    A = jnp.einsum('npc,nqc->npq', T, I)
    raw = jnp.maximum(r_T[:, :, None] - 2.0 * A + r_I[:, None, :], 0.0)
    col_min = jnp.min(raw, axis=1, keepdims=True)
    rel = raw / (col_min + EPS)
    w = jnp.exp((B_CONST - rel) / SIGMA)
    cs = w / jnp.sum(w, axis=1, keepdims=True)
    row_max = jnp.max(cs, axis=2)
    CS = jnp.mean(row_max, axis=1)
    return jnp.mean(-jnp.log(CS))


if __name__ == "__main__":
    key = jax.random.PRNGKey(0)
    kx, ky, kx2, ky2 = jax.random.split(key, 4)

    # batch=2, channels=4, spatial=16x16 -> P = 256 pixels per image
    x = jax.random.normal(kx, (2, 4, 16, 16), dtype=jnp.float32)
    y = jax.random.normal(ky, (2, 4, 16, 16), dtype=jnp.float32)

    out = jax.block_until_ready(contextual_loss(x, y, exp_in_bf16=False))
    ref = jax.block_until_ready(_reference(x, y))
    assert out.shape == (), f"expected scalar, got {out.shape}"
    assert jnp.isfinite(out), "non-finite loss"
    assert jnp.allclose(out, ref, rtol=1e-4, atol=1e-5), (out, ref)

    # Padded / masked path: P = 12*12 = 144 is not a multiple of 128.
    x2 = jax.random.normal(kx2, (2, 4, 12, 12), dtype=jnp.float32)
    y2 = jax.random.normal(ky2, (2, 4, 12, 12), dtype=jnp.float32)
    out2 = jax.block_until_ready(contextual_loss(x2, y2, exp_in_bf16=False))
    ref2 = jax.block_until_ready(_reference(x2, y2))
    assert jnp.isfinite(out2), "non-finite loss (padded path)"
    assert jnp.allclose(out2, ref2, rtol=1e-4, atol=1e-5), (out2, ref2)

    # bf16-EUP exp path (v6e / v7x only): looser tolerance, sums stay f32.
    if _supports_bf16_eup():
        out3 = jax.block_until_ready(contextual_loss(x, y))   # auto -> bf16 exp
        assert jnp.isfinite(out3), "non-finite loss (bf16 exp path)"
        assert jnp.allclose(out3, ref, rtol=3e-2, atol=1e-2), (out3, ref)

    print("KERNEL_OK")
</pallas_src>

<mosaic_0001>
module attributes {stable_mosaic.version = 11 : i64} {
  func.func @kernel(%arg0: i32, %arg1: i32, %arg2: memref<1x4x256xf32, #tpu.memory_space<vmem>>, %arg3: memref<1x4x256xf32, #tpu.memory_space<vmem>>, %arg4: memref<1x1x128xf32, #tpu.memory_space<vmem>>, %arg5: memref<256x1xf32, #tpu.memory_space<vmem>>, %arg6: memref<256x128xf32, #tpu.memory_space<vmem>>) attributes {dimension_semantics = [#tpu.dimension_semantics<parallel>, #tpu.dimension_semantics<arbitrary>], iteration_bounds = array<i64: 2, 1>, scalar_prefetch = 0 : i64, scratch_operands = 2 : i64, tpu.core_type = #tpu.core_type<tc>, window_params = [{transform_indices = @transform_0, window_bounds = array<i64: 1, 4, 256>}, {transform_indices = @transform_1, window_bounds = array<i64: 1, 4, 256>}, {transform_indices = @transform_2, window_bounds = array<i64: 1, 1, 128>}]} {
    %c0 = arith.constant 0 : index
    %c0_0 = arith.constant 0 : index
    %c0_1 = arith.constant 0 : index
    %0 = vector.load %arg2[%c0, %c0_0, %c0_1] : memref<1x4x256xf32, #tpu.memory_space<vmem>>, vector<1x4x256xf32>
    %1 = vector.shape_cast %0 : vector<1x4x256xf32> to vector<4x256xf32>
    %c0_2 = arith.constant 0 : index
    %c0_3 = arith.constant 0 : index
    %c0_4 = arith.constant 0 : index
    %2 = vector.load %arg3[%c0_2, %c0_3, %c0_4] : memref<1x4x256xf32, #tpu.memory_space<vmem>>, vector<1x4x256xf32>
    %3 = vector.shape_cast %2 : vector<1x4x256xf32> to vector<4x256xf32>
    %c0_i32 = arith.constant 0 : i32
    %4 = arith.cmpi eq, %arg1, %c0_i32 : i32
    %5 = arith.extui %4 : i1 to i32
    %c0_i32_5 = arith.constant 0 : i32
    %6 = arith.cmpi ne, %5, %c0_i32_5 : i32
    scf.if %6 {
      %cst_20 = arith.constant 0.000000e+00 : f32
      %42 = vector.broadcast %cst_20 : f32 to vector<256x128xf32>
      %c0_21 = arith.constant 0 : index
      %c0_22 = arith.constant 0 : index
      %43 = vector.load %arg6[%c0_21, %c0_22] : memref<256x128xf32, #tpu.memory_space<vmem>>, vector<256x128xf32>
      tpu.vector_store %arg6[%c0_21, %c0_22], %42 {strides = array<i32>} : memref<256x128xf32, #tpu.memory_space<vmem>>, vector<256x128xf32>,
      %cst_23 = arith.constant 1.000000e+00 : f32
      %44 = vector.broadcast %cst_23 : f32 to vector<4x1xf32>
      %45 = arith.mulf %1, %1 : vector<4x256xf32>
      %cst_24 = arith.constant dense<0.000000e+00> : vector<256x1xf32>
      %46 = tpu.matmul %45, %44, %cst_24 {dimension_numbers = #tpu.dot_dimension_numbers<[0], [0], [1], [1], [0, 1, 1, 1], [], []>} : vector<4x256xf32>, vector<4x1xf32>, vector<256x1xf32> -> vector<256x1xf32>
      %cst_25 = arith.constant 2.500000e-01 : f32
      %47 = vector.broadcast %cst_25 : f32 to vector<256x1xf32>
      %48 = arith.mulf %47, %46 : vector<256x1xf32>
      %c0_26 = arith.constant 0 : index
      %c0_27 = arith.constant 0 : index
      %49 = vector.load %arg5[%c0_26, %c0_27] : memref<256x1xf32, #tpu.memory_space<vmem>>, vector<256x1xf32>
      tpu.vector_store %arg5[%c0_26, %c0_27], %48 {strides = array<i32>} : memref<256x1xf32, #tpu.memory_space<vmem>>, vector<256x1xf32>,
    } else {
    }
    %7 = arith.mulf %3, %3 : vector<4x256xf32>
    %cst = arith.constant dense<0.000000e+00> : vector<256xf32>
    %8 = vector.multi_reduction <add>, %7, %cst [0] : vector<4x256xf32> to vector<256xf32>
    %9 = vector.shape_cast %8 : vector<256xf32> to vector<1x256xf32>
    %cst_6 = arith.constant dense<0.000000e+00> : vector<256x256xf32>
    %10 = tpu.matmul %1, %3, %cst_6 {dimension_numbers = #tpu.dot_dimension_numbers<[0], [0], [1], [1], [0, 1, 1, 1], [], []>} : vector<4x256xf32>, vector<4x256xf32>, vector<256x256xf32> -> vector<256x256xf32>
    %c0_7 = arith.constant 0 : index
    %c0_8 = arith.constant 0 : index
    %11 = vector.load %arg5[%c0_7, %c0_8] : memref<256x1xf32, #tpu.memory_space<vmem>>, vector<256x1xf32>
    %12 = vector.broadcast %11 : vector<256x1xf32> to vector<256x256xf32>
    %13 = arith.addf %12, %10 : vector<256x256xf32>
    %14 = vector.broadcast %9 : vector<1x256xf32> to vector<256x256xf32>
    %15 = arith.addf %13, %14 : vector<256x256xf32>
    %cst_9 = arith.constant 0.000000e+00 : f32
    %16 = vector.broadcast %cst_9 : f32 to vector<256x256xf32>
    %17 = arith.maximumf %15, %16 : vector<256x256xf32>
    %cst_10 = arith.constant dense<0x7F800000> : vector<256xf32>
    %18 = vector.multi_reduction <minimumf>, %17, %cst_10 [0] : vector<256x256xf32> to vector<256xf32>
    %19 = vector.shape_cast %18 : vector<256xf32> to vector<1x256xf32>
    %cst_11 = arith.constant 9.99999974E-6 : f32
    %20 = vector.broadcast %cst_11 : f32 to vector<1x256xf32>
    %21 = arith.addf %19, %20 : vector<1x256xf32>
    %22 = tpu.reciprocal %21 : vector<1x256xf32> -> vector<1x256xf32>
    %cst_12 = arith.constant 0.000000e+00 : f32
    %23 = vector.broadcast %cst_12 : f32 to vector<1x256xf32>
    %24 = arith.subf %23, %22 : vector<1x256xf32>
    %25 = vector.broadcast %24 : vector<1x256xf32> to vector<256x256xf32>
    %26 = arith.mulf %17, %25 : vector<256x256xf32>
    %27 = math.exp %26 : vector<256x256xf32>
    %cst_13 = arith.constant dense<0.000000e+00> : vector<256xf32>
    %28 = vector.multi_reduction <add>, %27, %cst_13 [0] : vector<256x256xf32> to vector<256xf32>
    %29 = vector.shape_cast %28 : vector<256xf32> to vector<1x256xf32>
    %30 = tpu.reciprocal %29 : vector<1x256xf32> -> vector<1x256xf32>
    %31 = vector.broadcast %30 : vector<1x256xf32> to vector<256x256xf32>
    %32 = arith.mulf %27, %31 : vector<256x256xf32>
    %33 = vector.extract_strided_slice %32 {offsets = [0, 0], sizes = [256, 128], strides = [1, 1]} : vector<256x256xf32> to vector<256x128xf32>
    %34 = vector.extract_strided_slice %32 {offsets = [0, 128], sizes = [256, 128], strides = [1, 1]} : vector<256x256xf32> to vector<256x128xf32>
    %35 = arith.maximumf %33, %34 : vector<256x128xf32>
    %c0_14 = arith.constant 0 : index
    %c0_15 = arith.constant 0 : index
    %36 = vector.load %arg6[%c0_14, %c0_15] : memref<256x128xf32, #tpu.memory_space<vmem>>, vector<256x128xf32>
    %37 = arith.maximumf %36, %35 : vector<256x128xf32>
    %c0_16 = arith.constant 0 : index
    %c0_17 = arith.constant 0 : index
    %38 = vector.load %arg6[%c0_16, %c0_17] : memref<256x128xf32, #tpu.memory_space<vmem>>, vector<256x128xf32>
    tpu.vector_store %arg6[%c0_16, %c0_17], %37 {strides = array<i32>} : memref<256x128xf32, #tpu.memory_space<vmem>>, vector<256x128xf32>,
    %c0_i32_18 = arith.constant 0 : i32
    %39 = arith.cmpi eq, %arg1, %c0_i32_18 : i32
    %40 = arith.extui %39 : i1 to i32
    %c0_i32_19 = arith.constant 0 : i32
    %41 = arith.cmpi ne, %40, %c0_i32_19 : i32
    scf.if %41 {
      %c0_20 = arith.constant 0 : index
      %c0_21 = arith.constant 0 : index
      %42 = vector.load %arg6[%c0_20, %c0_21] : memref<256x128xf32, #tpu.memory_space<vmem>>, vector<256x128xf32>
      %cst_22 = arith.constant dense<0xFF800000> : vector<256xf32>
      %43 = vector.multi_reduction <maximumf>, %42, %cst_22 [1] : vector<256x128xf32> to vector<256xf32>
      %44 = vector.shape_cast %43 : vector<256xf32> to vector<256x1xf32>
      %45 = vector.shape_cast %44 : vector<256x1xf32> to vector<1x256x1xf32>
      %cst_23 = arith.constant dense<0.000000e+00> : vector<1xf32>
      %46 = vector.multi_reduction <add>, %45, %cst_23 [1, 2] : vector<1x256x1xf32> to vector<1xf32>
      %47 = vector.shape_cast %46 : vector<1xf32> to vector<1x1x1xf32>
      %48 = vector.extract %47[0, 0, 0] : f32 from vector<1x1x1xf32>
      %cst_24 = arith.constant 2.560000e+02 : f32
      %49 = arith.divf %48, %cst_24 : f32
      %50 = vector.broadcast %49 : f32 to vector<1x1x128xf32>
      %c0_25 = arith.constant 0 : index
      %c0_26 = arith.constant 0 : index
      %c0_27 = arith.constant 0 : index
      %51 = vector.load %arg4[%c0_25, %c0_26, %c0_27] : memref<1x1x128xf32, #tpu.memory_space<vmem>>, vector<1x1x128xf32>
      tpu.vector_store %arg4[%c0_25, %c0_26, %c0_27], %50 {strides = array<i32>} : memref<1x1x128xf32, #tpu.memory_space<vmem>>, vector<1x1x128xf32>,
    } else {
    }
    return
  }
  func.func @transform_0(%arg0: i32, %arg1: i32) -> (i32, i32, i32) {
    %c0_i32 = arith.constant 0 : i32
    %c0_i32_0 = arith.constant 0 : i32
    %c0_i32_1 = arith.constant 0 : i32
    return %arg0, %c0_i32, %c0_i32_0 : i32, i32, i32
  }
  func.func @transform_1(%arg0: i32, %arg1: i32) -> (i32, i32, i32) {
    %c0_i32 = arith.constant 0 : i32
    %c0_i32_0 = arith.constant 0 : i32
    return %arg0, %c0_i32, %arg1 : i32, i32, i32
  }
  func.func @transform_2(%arg0: i32, %arg1: i32) -> (i32, i32, i32) {
    %c0_i32 = arith.constant 0 : i32
    %c0_i32_0 = arith.constant 0 : i32
    %c0_i32_1 = arith.constant 0 : i32
    return %arg0, %c0_i32, %c0_i32_0 : i32, i32, i32
  }
}

</mosaic_0001>

<bundles_post_ra>
// kernel: tpu_custom_call.1
= control target key start
LH: loop header
LB: loop body
LE: loop exit
PB: predicated region body
PF: predicated region fallthrough
CT: control target
= control target key end

     0   :  { %7 = vsyncpa [#allocation5], 0  ;;  %s4387_s0 = inlined_call_operand.hbm [shape: f32[2,4,256], index: 0, kind: input, shape index: {}]   ;;  %s4388_s1 = inlined_call_operand.hbm [shape: f32[2,4,256], index: 1, kind: input, shape index: {}]   ;;  %s4389_s2 = inlined_call_operand.hbm [shape: f32[2,1,128], index: 2, kind: output, shape index: {}]  }
   0x1   :  { %9 = vsyncpa [#allocation5 + $0x1], 0 }
   0x2   :  { %10 = vsyncpa [#allocation8], 0 }
   0x3   :  { %12 = vsyncpa [#allocation8 + $0x1], 0 }
   0x4   :  { %13 = vsyncpa [#allocation6], 0 }
   0x5   :  { %15 = vsyncpa [#allocation6 + $0x1], 0  ;;  %s2916_s9 = smov 0   ;;  %s2918_s10 = smov 0  }
   0x6   :  { %s2920_s11 = smov 0   ;;  %s2922_s12 = smov 0  }
   0x7   :  { %s2924_s13 = smov 0   ;;  %s2926_s14 = smov 0  }
   0x8 LB: > { %s2371_s15 = sadd.s32 4294967295, %s2893_s14   ;;  %s2372_s16 = sadd.s32 4294967294, %s2893_s14   ;;  %s2893_s14 = sphi %s2926_s14, %s21_s14   ;;  %s2889_s13 = sphi %s2924_s13, %s4660_s13   ;;  %s2885_s12 = sphi %s2922_s12, %s4659_s12   ;;  %s2881_s11 = sphi %s2920_s11, %s4658_s11   ;;  %s2877_s10 = sphi %s2918_s10, %s4657_s10   ;;  %s2873_s9 = sphi %s2916_s9, %s4656_s9  }
   0x9   : > { %s33_s17 = sadd.s32 1, %s2889_s13  ;;  %s40_s18 = sadd.s32 1, %s2881_s11 }
   0xa   : > { %p35_p0 = scmp.ge.s32.totalorder %s33_s17, 2  ;;  %p47_p1 = scmp.ne.s32.totalorder %s2881_s11, %s2877_s10 }
   0xb   : > { %p48_p2 = scmp.eq.s32.totalorder %s2893_s14, 0  ;;  %p53_p3 = scmp.ne.s32.totalorder %s2877_s10, %s2873_s9 }
   0xc   : > { %s4662_s17 = smov (%p35_p0, %s33_s17), 0  ;;  %p54_p5 = scmp.eq.s32.totalorder %s2371_s15, 0 }
   0xd   : > { %p2957_p4 = por %p48_p2, %p47_p1  ;;  %s37_s20 = ssub.s32 %s2889_s13, %s4662_s17 }
   0xe   : > { %p105_p6 = scmp.eq.s32.totalorder %s2371_s15, 1  ;;  %p38_p7 = scmp.eq.s32.totalorder %s37_s20, 0 }
   0xf   : > { %p2963_p8 = por %p54_p5, %p53_p3  ;;  %p111_p10 = scmp.eq.s32.totalorder %s2372_s16, 1 }
  0x10   : > { %p2967_p9 = por %p105_p6, %p47_p1  ;;  %p2560_p13 = scmp.lt.s32.totalorder %s2893_s14, 2 }
  0x11   : > { %s2972_s23 = scalar_select %p38_p7, %s2881_s11, %s40_s18  }
  0x12   : > { %p2974_p11 = por %p111_p10, %p53_p3  ;;  %s2981_s25 = sand.u32 1, %s2881_s11  }
  0x13   : > { %s2375_s26 = sshll.u32 %s2981_s25, 3  ;;  %s2454_s27 = sshll.u32 %s2889_s13, 7 }
  0x14   : > { %s141_s30 = scalar_lea.hbm %s4387_s0, %s2454_s27  ;;  %s135_s3 = scalar_lea.vmem [#allocation4], %s2375_s26 }
  0x15   : > { %s143_s4 = sshll.u32 %s135_s3, 4  ;;  %p2990_p0 = pnand %p2560_p13, %p2957_p4  ;;  %s144_s4 = int_to_ptr.vmem [resolvable:$true] %s143_s4 }
  0x16   : > { %p2381_p1 = scmp.ge.s32.totalorder %s2893_s14, 1  ;;  %p169_p2 = scmp.lt.s32.totalorder %s2893_s14, 3 }
  0x17   : > { %s132_s6 = scalar_lea.sflag [#allocation5], %s2981_s25  ;;  %p2755_p3 = pneg %p2990_p0 }
  0x18   : > { %s2766_s7 = scalar_lea.vmem %s144_s4, 128  ;;  %s2895_s8 = smov [#allocation4]  }
  0x19   : > { %p2767_p5 = scmp.ne.s32.totalorder %s144_s4, %s2766_s7  ;;  %s2771_s15 = sshll.u32 %s2895_s8, 4  ;;  %s2772_s15 = int_to_ptr.vmem [resolvable:$false] %s2771_s15 }
  0x1a   : > { %s2773_s16 = scalar_lea.vmem %s2772_s15, 256  ;;  %p2774_p4 = scmp.lt.s32.totalorder %s144_s4, %s2772_s15 }
  0x1b   : > { %p2769_p6 = pnand %p2767_p5, %p2755_p3  ;;  %p2775_p10 = scmp.lt.s32.totalorder %s2773_s16, %s2766_s7 }
  0x1d   : > { %p2770_p7 = pneg %p2769_p6  ;;  %p2776_p13 = por %p2775_p10, %p2774_p4 }
  0x1f   : > { %p2777_p12 = pnand %p2776_p13, %p2770_p7 }
  0x21   : > { %2780 = shalt.err (!%p2777_p12)
}
  0x22   : > { %2552 = dma.hbm_to_vmem [thread:$0]  (!%p2990_p0), %s141_s30, 128, %s144_s4, %s132_s6  }
  0x23   : > { %p3008_p5 = pnand %p2381_p1, %p169_p2  ;;  %s162_s28 = scalar_lea.hbm %s4388_s1, %s2454_s27 }
  0x24   : > { %s154_s29 = scalar_lea.vmem [#allocation7], %s2375_s26  ;;  %s151_s7 = scalar_lea.sflag [#allocation8], %s2981_s25 }
  0x25   : > { %s164_s3 = sshll.u32 %s154_s29, 4  ;;  %s2896_s30 = smov [#allocation7]   ;;  %s165_s3 = int_to_ptr.vmem [resolvable:$true] %s164_s3 }
  0x26   : > { %s2794_s8 = scalar_lea.vmem %s165_s3, 128  ;;  %s2799_s4 = sshll.u32 %s2896_s30, 4  ;;  %s2800_s4 = int_to_ptr.vmem [resolvable:$false] %s2799_s4 }
  0x27   : > { %p2795_p12 = scmp.ne.s32.totalorder %s165_s3, %s2794_s8  ;;  %s2801_s6 = scalar_lea.vmem %s2800_s4, 256 }
  0x28   : > { %p2802_p1 = scmp.lt.s32.totalorder %s165_s3, %s2800_s4  ;;  %p2803_p2 = scmp.lt.s32.totalorder %s2801_s6, %s2794_s8 }
  0x29   : > { %p2797_p6 = pnand %p2795_p12, %p2755_p3 }
  0x2a   : > { %p2804_p4 = por %p2803_p2, %p2802_p1 }
  0x2b   : > { %p2798_p7 = pneg %p2797_p6 }
  0x2d   : > { %p2805_p10 = pnand %p2804_p4, %p2798_p7 }
  0x2f   : > { %2808 = shalt.err (!%p2805_p10)
}
  0x30   : > { %2555 = dma.hbm_to_vmem [thread:$0]  (!%p2990_p0), %s162_s28, 128, %s165_s3, %s151_s7  }
  0x31   : > { %173 = sbr.rel (%p3008_p5) target bundleno = 1193 (0x4a9), region = 28 }
  0x36   : > { %s3024_s25 = sand.u32 1, %s2877_s10  }
  0x37   : > { %s2382_s26 = sshll.u32 %s3024_s25, 3  ;;  %s176_s27 = scalar_lea.sflag [#allocation5], %s3024_s25 }
  0x38   : > { %s179_s15 = scalar_lea.vmem [#allocation4], %s2382_s26 }
  0x39   : > { %2860 = dma.done.wait (%p2963_p8), %s176_s27, 128  }
  0x3a   : > { %2862 = vsyncadd (%p2963_p8), %s176_s27, 4294967168  ;;  %s185_s5 = scalar_lea.sflag [#allocation8], %s3024_s25  ;;  %s188_s16 = scalar_lea.vmem [#allocation7], %s2382_s26 }
  0x3b   : > { %2864 = dma.done.wait (%p2963_p8), %s185_s5, 128  }
  0x3c   : > { %2866 = vsyncadd (%p2963_p8), %s185_s5, 4294967168  ;;  %v214_v0 = vld [vmem:[%s179_s15] sm:$0xff]  ;;  %vm417_vm0 = vcmask 1043456   ;;  %v2897_v2 = vmov 1.0   ;;  %v3039_v5 = vld [vmem:[%s188_s16] sm:$0xff]  ;;  %v2898_v7 = vmov 0.0  }
  0x3d   : > { %v252_v1 = vmul.f32 %v214_v0, %v214_v0  ;;  %2489 = vmatprep.subr.msk.mxu0 %vm417_vm0, %v2897_v2  ;;  %v731_v4 = vcombine.high %v214_v0, %v214_v0  ;;  %v798_v6 = vcombine.high %v3039_v5, %v3039_v5  ;;  %1012 = vmatprep.mubr.f32.mxu1 %v2898_v7  ;;  %vm320_vm1 = vcmask 31744   ;;  %s212_s21 = scalar_lea.vmem [#allocation9], %s3024_s25  ;;  %s2451_s19 = sshll.u32 %s2885_s12, 4 }
  0x3e   : > { %2490 = vmatpush3.msk.msra.mxu0 %vm417_vm0, %v2897_v2  ;;  %v2899_v42 = vmov 0   ;;  %vm678_vm2 = vcmask 7168   ;;  %s2271_s18 = sshll.u32 %s212_s21, 4  ;;  %s4345_s7 = scalar_lea.hbm %s4389_s2, %s2451_s19  ;;  %s2272_s18 = int_to_ptr.vmem [resolvable:$true] %s2271_s18 }
  0x3f   : > { %256 = vxpose.xlu0.b32.start.end [1/1] (short) %v252_v1, 128  ;;  %v254_v3 = vcombine.high %v252_v1, %v252_v1  ;;  %2417 = vmatprep.subr.msk.mxu0 %vm417_vm0, %v798_v6  ;;  %s2259_s8 = scalar_lea.sflag [#allocation6], %s3024_s25  ;;  %s2809_s30 = scalar_lea.vmem %s2272_s18, 16 }
  0x40   : > { %2539 = vmatprep.subr.msk.mxu1 %vm417_vm0, %v798_v6  ;;  %p2810_p8 = scmp.ne.s32.totalorder %s2272_s18, %s2809_s30  ;;  %s2900_s4 = smov [#allocation9]  }
  0x41   : > { %288 = vxpose.xlu1.b32.start.end [1/1] (short) %v254_v3, 128  ;;  %2540 = vmatpush1.msk.msra.mxu1 %vm417_vm0, %v3039_v5  ;;  %s2813_s6 = sshll.u32 %s2900_s4, 4  ;;  %s2814_s6 = int_to_ptr.vmem [resolvable:$false] %s2813_s6 }
  0x42   : > { %p2811_p0 = pnand %p2810_p8, %p2967_p9  ;;  %s2815_s12 = scalar_lea.vmem %s2814_s6, 32 }
  0x43   : > { %p2816_p13 = scmp.lt.s32.totalorder %s2272_s18, %s2814_s6  ;;  %p2817_p5 = scmp.lt.s32.totalorder %s2815_s12, %s2809_s30 }
  0x44   : > { %p2812_p3 = pneg %p2811_p0 }
  0x45   : > { %p2818_p12 = por %p2817_p5, %p2816_p13 }
  0x47   : > { %p2819_p6 = pnand %p2818_p12, %p2812_p3 }
  0x7c   : > { %733 = vxpose.xlu0.b32.start.end [1/1] (short) %v214_v0, 128 }
  0x7e   : > { %765 = vxpose.xlu1.b32.start.end [1/1] (short) %v731_v4, 128 }
  0x9c   : > { %2613 = vset.pattern.permute.xlu1 %v2899_v42 }
  0xa5   : > { %2614 = vset.pattern.permute.xlu0 %v2899_v42 }
  0xbb   : > { %v272_v8 = vpop.trf.xlu0 }
  0xbc   : > { %2491 = vmatprep.mubr.msk.f32.mxu0 %vm320_vm1, %v272_v8 }
  0xbd   : > { %v304_v9 = vpop.trf.xlu1 }
  0xbf   : > { %v273_v10 = vpop.trf.xlu0 }
  0xc0   : > { %2492 = vmatmul.mubr.msk.f32.vlgmr.msra.gmra.mxu0 %vm320_vm1, %v273_v10 }
  0xc1   : > { %v305_v11 = vpop.trf.xlu1  ;;  %2418 = vmatpush1.msk.msra.mxu0 %vm417_vm0, %v3039_v5 }
  0xc3   : > { %v274_v12 = vpop.trf.xlu0 }
  0xc4   : > { %2494 = vmatprep.mubr.msk.f32.mxu0 %vm320_vm1, %v274_v12 }
  0xc5   : > { %v306_v14 = vpop.trf.xlu1 }
  0xc7   : > { %v275_v13 = vpop.trf.xlu0 }
  0xc8   : > { %2495 = vmatmul.mubr.msk.f32.gmra.mxu0 %vm320_vm1, %v275_v13 }
  0xc9   : > { %v307_v16 = vpop.trf.xlu1 }
  0xcb   : > { %v276_v15 = vpop.trf.xlu0 }
  0xcc   : > { %2497 = vmatprep.mubr.msk.f32.mxu0 %vm320_vm1, %v276_v15 }
  0xcd   : > { %v308_v19 = vpop.trf.xlu1 }
  0xcf   : > { %v277_v17 = vpop.trf.xlu0 }
  0xd0   : > { %2498 = vmatmul.mubr.msk.f32.gmra.mxu0 %vm320_vm1, %v277_v17 }
  0xd1   : > { %v309_v21 = vpop.trf.xlu1 }
  0xd3   : > { %v278_v18 = vpop.trf.xlu0 }
  0xd4   : > { %2500 = vmatprep.mubr.msk.f32.mxu0 %vm320_vm1, %v278_v18 }
  0xd5   : > { %v310_v24 = vpop.trf.xlu1 }
  0xd7   : > { %v279_v20 = vpop.trf.xlu0 }
  0xd8   : > { %2501 = vmatmul.mubr.msk.f32.gmra.mxu0 %vm320_vm1, %v279_v20 }
  0xd9   : > { %v311_v26 = vpop.trf.xlu1 }
  0xdb   : > { %v280_v22 = vpop.trf.xlu0 }
  0xdc   : > { %2503 = vmatprep.mubr.msk.f32.mxu0 %vm320_vm1, %v280_v22 }
  0xdd   : > { %v312_v29 = vpop.trf.xlu1 }
  0xdf   : > { %v281_v23 = vpop.trf.xlu0 }
  0xe0   : > { %2504 = vmatmul.mubr.msk.f32.gmra.mxu0 %vm320_vm1, %v281_v23 }
  0xe1   : > { %v313_v31 = vpop.trf.xlu1 }
  0xe3   : > { %v282_v25 = vpop.trf.xlu0 }
  0xe4   : > { %2506 = vmatprep.mubr.msk.f32.mxu0 %vm320_vm1, %v282_v25 }
  0xe5   : > { %v314_v34 = vpop.trf.xlu1 }
  0xe7   : > { %v283_v27 = vpop.trf.xlu0 }
  0xe8   : > { %2507 = vmatmul.mubr.msk.f32.gmra.mxu0 %vm320_vm1, %v283_v27 }
  0xe9   : > { %v315_v36 = vpop.trf.xlu1 }
  0xeb   : > { %v284_v28 = vpop.trf.xlu0 }
  0xec   : > { %2509 = vmatprep.mubr.msk.f32.mxu0 %vm320_vm1, %v284_v28 }
  0xed   : > { %v316_v38 = vpop.trf.xlu1 }
  0xef   : > { %v285_v30 = vpop.trf.xlu0 }
  0xf0   : > { %2510 = vmatmul.mubr.msk.f32.gmra.mxu0 %vm320_vm1, %v285_v30 }
  0xf1   : > { %v317_v41 = vpop.trf.xlu1 }
  0xf3   : > { %v286_v32 = vpop.trf.xlu0 }
  0xf4   : > { %2512 = vmatprep.mubr.msk.f32.mxu0 %vm320_vm1, %v286_v32 }
  0xf5   : > { %v318_v44 = vpop.trf.xlu1 }
  0xf7   : > { %v287_v33 = vpop.trf.xlu0 }
  0xf8   : > { %2513 = vmatmul.mubr.msk.f32.gmra.mxu0 %vm320_vm1, %v287_v33 }
  0xf9   : > { %2515 = vmatprep.mubr.msk.f32.mxu0 %vm320_vm1, %v304_v9  ;;  %v319_v47 = vpop.trf.xlu1 }
  0xfb   : > { %v749_v35 = vpop.trf.xlu0 }
  0xfc   : > { %2516 = vmatmul.mubr.msk.f32.gmra.mxu0 %vm320_vm1, %v305_v11 }
  0xfd   : > { %2518 = vmatprep.mubr.msk.f32.mxu0 %vm320_vm1, %v306_v14  ;;  %v781_v50 = vpop.trf.xlu1 }
  0xff   : > { %v750_v37 = vpop.trf.xlu0 }
 0x100   : > { %2519 = vmatmul.mubr.msk.f32.gmra.mxu0 %vm320_vm1, %v307_v16 }
 0x101   : > { %2521 = vmatprep.mubr.msk.f32.mxu0 %vm320_vm1, %v308_v19  ;;  %v782_v52 = vpop.trf.xlu1 }
 0x103   : > { %v751_v39 = vpop.trf.xlu0 }
 0x104   : > { %2522 = vmatmul.mubr.msk.f32.gmra.mxu0 %vm320_vm1, %v309_v21 }
 0x105   : > { %2524 = vmatprep.mubr.msk.f32.mxu0 %vm320_vm1, %v310_v24  ;;  %v783_v55 = vpop.trf.xlu1 }
 0x107   : > { %v752_v40 = vpop.trf.xlu0 }
 0x108   : > { %2525 = vmatmul.mubr.msk.f32.gmra.mxu0 %vm320_vm1, %v311_v26 }
 0x109   : > { %2527 = vmatprep.mubr.msk.f32.mxu0 %vm320_vm1, %v312_v29  ;;  %v784_v57 = vpop.trf.xlu1 }
 0x10b   : > { %v753_v43 = vpop.trf.xlu0 }
 0x10c   : > { %2528 = vmatmul.mubr.msk.f32.gmra.mxu0 %vm320_vm1, %v313_v31 }
 0x10d   : > { %2530 = vmatprep.mubr.msk.f32.mxu0 %vm320_vm1, %v314_v34  ;;  %v785_v60 = vpop.trf.xlu1 }
 0x10f   : > { %v754_v45 = vpop.trf.xlu0 }
 0x110   : > { %2531 = vmatmul.mubr.msk.f32.gmra.mxu0 %vm320_vm1, %v315_v36 }
 0x111   : > { %2533 = vmatprep.mubr.msk.f32.mxu0 %vm320_vm1, %v316_v38  ;;  %v786_v62 = vpop.trf.xlu1 }
 0x113   : > { %v755_v46 = vpop.trf.xlu0 }
 0x114   : > { %2534 = vmatmul.mubr.msk.f32.gmra.mxu0 %vm320_vm1, %v317_v41 }
 0x115   : > { %2536 = vmatprep.mubr.msk.f32.mxu0 %vm320_vm1, %v318_v44  ;;  %v787_v63 = vpop.trf.xlu1 }
 0x117   : > { %v756_v48 = vpop.trf.xlu0 }
 0x118   : > { %2537 = vmatmul.mubr.msk.f32.gmra.mxu0 %vm320_vm1, %v319_v47 }
 0x119   : > { %964 = vmatprep.mubr.f32.mxu0 %v2898_v7  ;;  %v788_v0 = vpop.trf.xlu1 }
 0x11b   : > { %v757_v49 = vpop.trf.xlu0 }
 0x11c   : > { %2419 = vmatmul.mubr.msk.f32.vlgmr.msra.gmra.mxu0 %vm320_vm1, %v749_v35  ;;  %2427 = vmatmul.mubr.msk.f32.vlgmr.msra.gmra.mxu1 %vm320_vm1, %v757_v49 }
 0x11d   : > { %970 = vmatprep.mubr.f32.mxu0 %v2898_v7  ;;  %1018 = vmatprep.mubr.f32.mxu1 %v2898_v7  ;;  %v789_v1 = vpop.trf.xlu1 }
 0x11f   : > { %v758_v51 = vpop.trf.xlu0 }
 0x120   : > { %2420 = vmatmul.mubr.msk.f32.gmra.mxu0 %vm320_vm1, %v750_v37  ;;  %2428 = vmatmul.mubr.msk.f32.gmra.mxu1 %vm320_vm1, %v758_v51 }
 0x121   : > { %976 = vmatprep.mubr.f32.mxu0 %v2898_v7  ;;  %1024 = vmatprep.mubr.f32.mxu1 %v2898_v7  ;;  %v790_v2 = vpop.trf.xlu1 }
 0x123   : > { %v759_v53 = vpop.trf.xlu0 }
 0x124   : > { %2421 = vmatmul.mubr.msk.f32.gmra.mxu0 %vm320_vm1, %v751_v39  ;;  %2429 = vmatmul.mubr.msk.f32.gmra.mxu1 %vm320_vm1, %v759_v53 }
 0x125   : > { %982 = vmatprep.mubr.f32.mxu0 %v2898_v7  ;;  %1030 = vmatprep.mubr.f32.mxu1 %v2898_v7  ;;  %v791_v3 = vpop.trf.xlu1 }
 0x127   : > { %v760_v54 = vpop.trf.xlu0 }
 0x128   : > { %2422 = vmatmul.mubr.msk.f32.gmra.mxu0 %vm320_vm1, %v752_v40  ;;  %2430 = vmatmul.mubr.msk.f32.gmra.mxu1 %vm320_vm1, %v760_v54 }
 0x129   : > { %988 = vmatprep.mubr.f32.mxu0 %v2898_v7  ;;  %1036 = vmatprep.mubr.f32.mxu1 %v2898_v7  ;;  %v792_v4 = vpop.trf.xlu1 }
 0x12b   : > { %v761_v56 = vpop.trf.xlu0 }
 0x12c   : > { %2423 = vmatmul.mubr.msk.f32.gmra.mxu0 %vm320_vm1, %v753_v43  ;;  %2431 = vmatmul.mubr.msk.f32.gmra.mxu1 %vm320_vm1, %v761_v56 }
 0x12d   : > { %994 = vmatprep.mubr.f32.mxu0 %v2898_v7  ;;  %1042 = vmatprep.mubr.f32.mxu1 %v2898_v7  ;;  %v793_v6 = vpop.trf.xlu1 }
 0x12f   : > { %v762_v58 = vpop.trf.xlu0 }
 0x130   : > { %2424 = vmatmul.mubr.msk.f32.gmra.mxu0 %vm320_vm1, %v754_v45  ;;  %2432 = vmatmul.mubr.msk.f32.gmra.mxu1 %vm320_vm1, %v762_v58 }
 0x131   : > { %1000 = vmatprep.mubr.f32.mxu0 %v2898_v7  ;;  %1048 = vmatprep.mubr.f32.mxu1 %v2898_v7  ;;  %v794_v8 = vpop.trf.xlu1 }
 0x133   : > { %v763_v59 = vpop.trf.xlu0 }
 0x134   : > { %2425 = vmatmul.mubr.msk.f32.gmra.mxu0 %vm320_vm1, %v755_v46  ;;  %2433 = vmatmul.mubr.msk.f32.gmra.mxu1 %vm320_vm1, %v763_v59 }
 0x135   : > { %1006 = vmatprep.mubr.f32.mxu0 %v2898_v7  ;;  %1054 = vmatprep.mubr.f32.mxu1 %v2898_v7  ;;  %v795_v9 = vpop.trf.xlu1 }
 0x137   : > { %v764_v61 = vpop.trf.xlu0 }
 0x138   : > { %2426 = vmatmul.mubr.msk.f32.gmra.mxu0 %vm320_vm1, %v756_v48  ;;  %2434 = vmatmul.mubr.msk.f32.gmra.mxu1 %vm320_vm1, %v764_v61 }
 0x139   : > { %1060 = vmatprep.mubr.f32.mxu1 %v2898_v7  ;;  %v796_v10 = vpop.trf.xlu1 }
 0x13c   : > { %2435 = vmatmul.mubr.msk.f32.gmra.mxu1 %vm320_vm1, %v781_v50 }
 0x13d   : > { %1066 = vmatprep.mubr.f32.mxu1 %v2898_v7 }
 0x140   : > { %2436 = vmatmul.mubr.msk.f32.gmra.mxu1 %vm320_vm1, %v782_v52 }
 0x141   : > { %1072 = vmatprep.mubr.f32.mxu1 %v2898_v7 }
 0x144   : > { %2437 = vmatmul.mubr.msk.f32.gmra.mxu1 %vm320_vm1, %v783_v55 }
 0x145   : > { %1078 = vmatprep.mubr.f32.mxu1 %v2898_v7 }
 0x148   : > { %2438 = vmatmul.mubr.msk.f32.gmra.mxu1 %vm320_vm1, %v784_v57 }
 0x149   : > { %1084 = vmatprep.mubr.f32.mxu1 %v2898_v7 }
 0x14c   : > { %2439 = vmatmul.mubr.msk.f32.gmra.mxu1 %vm320_vm1, %v785_v60 }
 0x14d   : > { %1090 = vmatprep.mubr.f32.mxu1 %v2898_v7 }
 0x150   : > { %2440 = vmatmul.mubr.msk.f32.gmra.mxu1 %vm320_vm1, %v786_v62 }
 0x151   : > { %1096 = vmatprep.mubr.f32.mxu1 %v2898_v7 }
 0x154   : > { %2441 = vmatmul.mubr.msk.f32.gmra.mxu1 %vm320_vm1, %v787_v63 }
 0x155   : > { %1102 = vmatprep.mubr.f32.mxu1 %v2898_v7 }
 0x158   : > { %2442 = vmatmul.mubr.msk.f32.gmra.mxu1 %vm320_vm1, %v788_v0 }
 0x159   : > { %1108 = vmatprep.mubr.f32.mxu1 %v2898_v7 }
 0x15c   : > { %2443 = vmatmul.mubr.msk.f32.gmra.mxu1 %vm320_vm1, %v789_v1 }
 0x15d   : > { %1114 = vmatprep.mubr.f32.mxu1 %v2898_v7 }
 0x160   : > { %2444 = vmatmul.mubr.msk.f32.gmra.mxu1 %vm320_vm1, %v790_v2 }
 0x161   : > { %1120 = vmatprep.mubr.f32.mxu1 %v2898_v7 }
 0x164   : > { %2445 = vmatmul.mubr.msk.f32.gmra.mxu1 %vm320_vm1, %v791_v3 }
 0x165   : > { %1126 = vmatprep.mubr.f32.mxu1 %v2898_v7 }
 0x168   : > { %2446 = vmatmul.mubr.msk.f32.gmra.mxu1 %vm320_vm1, %v792_v4 }
 0x169   : > { %1132 = vmatprep.mubr.f32.mxu1 %v2898_v7 }
 0x16c   : > { %2447 = vmatmul.mubr.msk.f32.gmra.mxu1 %vm320_vm1, %v793_v6 }
 0x16d   : > { %1138 = vmatprep.mubr.f32.mxu1 %v2898_v7 }
 0x170   : > { %2448 = vmatmul.mubr.msk.f32.gmra.mxu1 %vm320_vm1, %v794_v8 }
 0x171   : > { %1144 = vmatprep.mubr.f32.mxu1 %v2898_v7 }
 0x174   : > { %2449 = vmatmul.mubr.msk.f32.gmra.mxu1 %vm320_vm1, %v795_v9 }
 0x175   : > { %1150 = vmatprep.mubr.f32.mxu1 %v2898_v7 }
 0x178   : > { %2450 = vmatmul.mubr.msk.f32.gmra.mxu1 %vm320_vm1, %v796_v10 }
 0x180   : > { %v2493_v11 = vpop.f32.mrf.mxu0 }
 0x181   : > { %v647_v12 = vmul.f32 0.25, %v2493_v11 }
 0x182   : > { %v487_v13 = vpop.f32.mrf.mxu0 }
 0x183   : > { %680 = vst.msk [vmem:[#allocation2 + $0x8] sm:$0xff] %vm678_vm2, %v647_v12  ;;  %v646_v14 = vmul.f32 0.25, %v487_v13 }
 0x185   : > { %679 = vst.msk [vmem:[#allocation2] sm:$0xff] %vm678_vm2, %v646_v14 }
 0x188   : > { %v2496_v15 = vpop.f32.mrf.mxu0 }
 0x189   : > { %v649_v16 = vmul.f32 0.25, %v2496_v15 }
 0x18a   : > { %v497_v17 = vpop.f32.mrf.mxu0  ;;  %v1158_v18 = vld [vmem:[#allocation2 + $0x8] sm:$0xff] }
 0x18b   : > { %682 = vst.msk [vmem:[#allocation2 + $0x18] sm:$0xff] %vm678_vm2, %v649_v16  ;;  %v648_v19 = vmul.f32 0.25, %v497_v17  ;;  %1196 = vperm.xlu1 %2613, %v1158_v18  }
 0x18c   : > { %v1157_v7 = vld [vmem:[#allocation2] sm:$0xff] }
 0x18d   : > { %681 = vst.msk [vmem:[#allocation2 + $0x10] sm:$0xff] %vm678_vm2, %v648_v19  ;;  %1191 = vperm.xlu0 %2614, %v1157_v7  }
 0x190   : > { %v2499_v20 = vpop.f32.mrf.mxu0 }
 0x191   : > { %v651_v21 = vmul.f32 0.25, %v2499_v20 }
 0x192   : > { %v507_v22 = vpop.f32.mrf.mxu0  ;;  %v1160_v23 = vld [vmem:[#allocation2 + $0x18] sm:$0xff] }
 0x193   : > { %684 = vst.msk [vmem:[#allocation2 + $0x28] sm:$0xff] %vm678_vm2, %v651_v21  ;;  %v650_v24 = vmul.f32 0.25, %v507_v22  ;;  %1206 = vperm.xlu1 %2613, %v1160_v23  }
 0x194   : > { %v1159_v25 = vld [vmem:[#allocation2 + $0x10] sm:$0xff] }
 0x195   : > { %683 = vst.msk [vmem:[#allocation2 + $0x20] sm:$0xff] %vm678_vm2, %v650_v24 }
 0x197   : > { %1201 = vperm.xlu1 %2613, %v1159_v25  }
 0x198   : > { %v2502_v26 = vpop.f32.mrf.mxu0 }
 0x199   : > { %v653_v27 = vmul.f32 0.25, %v2502_v26 }
 0x19a   : > { %v517_v28 = vpop.f32.mrf.mxu0  ;;  %v1162_v29 = vld [vmem:[#allocation2 + $0x28] sm:$0xff] }
 0x19b   : > { %686 = vst.msk [vmem:[#allocation2 + $0x38] sm:$0xff] %vm678_vm2, %v653_v27  ;;  %v652_v30 = vmul.f32 0.25, %v517_v28  ;;  %1216 = vperm.xlu0 %2614, %v1162_v29  }
 0x19c   : > { %v1161_v31 = vld [vmem:[#allocation2 + $0x20] sm:$0xff] }
 0x19d   : > { %685 = vst.msk [vmem:[#allocation2 + $0x30] sm:$0xff] %vm678_vm2, %v652_v30  ;;  %1211 = vperm.xlu1 %2613, %v1161_v31  }
 0x1a0   : > { %v2505_v32 = vpop.f32.mrf.mxu0 }
 0x1a1   : > { %v655_v33 = vmul.f32 0.25, %v2505_v32 }
 0x1a2   : > { %v527_v34 = vpop.f32.mrf.mxu0  ;;  %v1164_v35 = vld [vmem:[#allocation2 + $0x38] sm:$0xff] }
 0x1a3   : > { %688 = vst.msk [vmem:[#allocation2 + $0x48] sm:$0xff] %vm678_vm2, %v655_v33  ;;  %v654_v36 = vmul.f32 0.25, %v527_v34  ;;  %1226 = vperm.xlu0 %2614, %v1164_v35  }
 0x1a4   : > { %v1163_v37 = vld [vmem:[#allocation2 + $0x30] sm:$0xff] }
 0x1a5   : > { %687 = vst.msk [vmem:[#allocation2 + $0x40] sm:$0xff] %vm678_vm2, %v654_v36  ;;  %1221 = vperm.xlu1 %2613, %v1163_v37  }
 0x1a8   : > { %v2508_v38 = vpop.f32.mrf.mxu0 }
 0x1a9   : > { %v657_v39 = vmul.f32 0.25, %v2508_v38 }
 0x1aa   : > { %v537_v40 = vpop.f32.mrf.mxu0  ;;  %v1166_v41 = vld [vmem:[#allocation2 + $0x48] sm:$0xff] }
 0x1ab   : > { %690 = vst.msk [vmem:[#allocation2 + $0x58] sm:$0xff] %vm678_vm2, %v657_v39  ;;  %v656_v42 = vmul.f32 0.25, %v537_v40  ;;  %1236 = vperm.xlu0 %2614, %v1166_v41  }
 0x1ac   : > { %v1165_v43 = vld [vmem:[#allocation2 + $0x40] sm:$0xff] }
 0x1ad   : > { %689 = vst.msk [vmem:[#allocation2 + $0x50] sm:$0xff] %vm678_vm2, %v656_v42  ;;  %1231 = vperm.xlu1 %2613, %v1165_v43  }
 0x1b0   : > { %v2511_v44 = vpop.f32.mrf.mxu0 }
 0x1b1   : > { %v659_v45 = vmul.f32 0.25, %v2511_v44 }
 0x1b2   : > { %v547_v46 = vpop.f32.mrf.mxu0  ;;  %v1168_v47 = vld [vmem:[#allocation2 + $0x58] sm:$0xff] }
 0x1b3   : > { %692 = vst.msk [vmem:[#allocation2 + $0x68] sm:$0xff] %vm678_vm2, %v659_v45  ;;  %v658_v48 = vmul.f32 0.25, %v547_v46  ;;  %1246 = vperm.xlu0 %2614, %v1168_v47  }
 0x1b4   : > { %v1167_v49 = vld [vmem:[#allocation2 + $0x50] sm:$0xff] }
 0x1b5   : > { %691 = vst.msk [vmem:[#allocation2 + $0x60] sm:$0xff] %vm678_vm2, %v658_v48  ;;  %1241 = vperm.xlu1 %2613, %v1167_v49  }
 0x1b8   : > { %v2514_v50 = vpop.f32.mrf.mxu0 }
 0x1b9   : > { %v661_v51 = vmul.f32 0.25, %v2514_v50 }
 0x1ba   : > { %v557_v52 = vpop.f32.mrf.mxu0  ;;  %v1170_v53 = vld [vmem:[#allocation2 + $0x68] sm:$0xff] }
 0x1bb   : > { %694 = vst.msk [vmem:[#allocation2 + $0x78] sm:$0xff] %vm678_vm2, %v661_v51  ;;  %v660_v54 = vmul.f32 0.25, %v557_v52  ;;  %1256 = vperm.xlu0 %2614, %v1170_v53  }
 0x1bc   : > { %v2517_v55 = vpop.f32.mrf.mxu0  ;;  %v1169_v56 = vld [vmem:[#allocation2 + $0x60] sm:$0xff] }
 0x1bd   : > { %693 = vst.msk [vmem:[#allocation2 + $0x70] sm:$0xff] %vm678_vm2, %v660_v54  ;;  %v663_v57 = vmul.f32 0.25, %v2517_v55  ;;  %1251 = vperm.xlu1 %2613, %v1169_v56  }
 0x1be   : > { %v567_v58 = vpop.f32.mrf.mxu0 }
 0x1bf   : > { %696 = vst.msk [vmem:[#allocation2 + $0x88] sm:$0xff] %vm678_vm2, %v663_v57  ;;  %v662_v59 = vmul.f32 0.25, %v567_v58 }
 0x1c0   : > { %v2520_v60 = vpop.f32.mrf.mxu0 }
 0x1c1   : > { %695 = vst.msk [vmem:[#allocation2 + $0x80] sm:$0xff] %vm678_vm2, %v662_v59  ;;  %v665_v61 = vmul.f32 0.25, %v2520_v60 }
 0x1c2   : > { %v577_v62 = vpop.f32.mrf.mxu0  ;;  %v1172_v63 = vld [vmem:[#allocation2 + $0x78] sm:$0xff] }
 0x1c3   : > { %698 = vst.msk [vmem:[#allocation2 + $0x98] sm:$0xff] %vm678_vm2, %v665_v61  ;;  %v664_v0 = vmul.f32 0.25, %v577_v62  ;;  %1266 = vperm.xlu0 %2614, %v1172_v63  }
 0x1c4   : > { %v2523_v1 = vpop.f32.mrf.mxu0  ;;  %v1171_v2 = vld [vmem:[#allocation2 + $0x70] sm:$0xff] }
 0x1c5   : > { %697 = vst.msk [vmem:[#allocation2 + $0x90] sm:$0xff] %vm678_vm2, %v664_v0  ;;  %v667_v3 = vmul.f32 0.25, %v2523_v1  ;;  %1261 = vperm.xlu1 %2613, %v1171_v2  }
 0x1c6   : > { %v587_v4 = vpop.f32.mrf.mxu0  ;;  %v1174_v6 = vld [vmem:[#allocation2 + $0x88] sm:$0xff] }
 0x1c7   : > { %700 = vst.msk [vmem:[#allocation2 + $0xa8] sm:$0xff] %vm678_vm2, %v667_v3  ;;  %v666_v8 = vmul.f32 0.25, %v587_v4  ;;  %1276 = vperm.xlu0 %2614, %v1174_v6  }
 0x1c8   : > { %v2526_v9 = vpop.f32.mrf.mxu0  ;;  %v1173_v10 = vld [vmem:[#allocation2 + $0x80] sm:$0xff] }
 0x1c9   : > { %699 = vst.msk [vmem:[#allocation2 + $0xa0] sm:$0xff] %vm678_vm2, %v666_v8  ;;  %v669_v11 = vmul.f32 0.25, %v2526_v9  ;;  %1271 = vperm.xlu1 %2613, %v1173_v10   ;;  %v711_v8 = vmul.f32 %v3039_v5, %v3039_v5 }
 0x1ca   : > { %v597_v12 = vpop.f32.mrf.mxu0  ;;  %v1176_v13 = vld [vmem:[#allocation2 + $0x98] sm:$0xff] }
 0x1cb   : > { %702 = vst.msk [vmem:[#allocation2 + $0xb8] sm:$0xff] %vm678_vm2, %v669_v11  ;;  %v668_v14 = vmul.f32 0.25, %v597_v12  ;;  %1286 = vperm.xlu0 %2614, %v1176_v13   ;;  %v713_v12 = vcombine.high %v711_v8, %v711_v8 }
 0x1cc   : > { %v2529_v15 = vpop.f32.mrf.mxu0  ;;  %v1175_v16 = vld [vmem:[#allocation2 + $0x90] sm:$0xff] }
 0x1cd   : > { %701 = vst.msk [vmem:[#allocation2 + $0xb0] sm:$0xff] %vm678_vm2, %v668_v14  ;;  %v671_v17 = vmul.f32 0.25, %v2529_v15  ;;  %1281 = vperm.xlu1 %2613, %v1175_v16   ;;  %v716_v15 = vsel %vm417_vm0, %v711_v8, 0.0 }
 0x1ce   : > { %v607_v18 = vpop.f32.mrf.mxu0  ;;  %v1178_v19 = vld [vmem:[#allocation2 + $0xa8] sm:$0xff] }
 0x1cf   : > { %704 = vst.msk [vmem:[#allocation2 + $0xc8] sm:$0xff] %vm678_vm2, %v671_v17  ;;  %v670_v7 = vmul.f32 0.25, %v607_v18  ;;  %1296 = vperm.xlu0 %2614, %v1178_v19   ;;  %v723_v17 = vsel %vm417_vm0, %v713_v12, 0.0  ;;  %v717_v19 = vrot.slane %v716_v15, 4 }
 0x1d0   : > { %v2532_v20 = vpop.f32.mrf.mxu0  ;;  %v1177_v21 = vld [vmem:[#allocation2 + $0xa0] sm:$0xff]  ;;  %v724_v5 = vrot.slane %v723_v17, 4 }
 0x1d1   : > { %703 = vst.msk [vmem:[#allocation2 + $0xc0] sm:$0xff] %vm678_vm2, %v670_v7  ;;  %v673_v22 = vmul.f32 0.25, %v2532_v20  ;;  %1291 = vperm.xlu1 %2613, %v1177_v21  }
 0x1d2   : > { %v617_v23 = vpop.f32.mrf.mxu0  ;;  %v1180_v24 = vld [vmem:[#allocation2 + $0xb8] sm:$0xff] }
 0x1d3   : > { %706 = vst.msk [vmem:[#allocation2 + $0xd8] sm:$0xff] %vm678_vm2, %v673_v22  ;;  %v672_v25 = vmul.f32 0.25, %v617_v23  ;;  %1306 = vperm.xlu0 %2614, %v1180_v24   ;;  %v718_v22 = vadd.f32 %v717_v19, %v716_v15  ;;  %v725_v24 = vadd.f32 %v724_v5, %v723_v17 }
 0x1d4   : > { %v2535_v26 = vpop.f32.mrf.mxu0  ;;  %v1179_v27 = vld [vmem:[#allocation2 + $0xb0] sm:$0xff] }
 0x1d5   : > { %705 = vst.msk [vmem:[#allocation2 + $0xd0] sm:$0xff] %vm678_vm2, %v672_v25  ;;  %v675_v28 = vmul.f32 0.25, %v2535_v26  ;;  %1301 = vperm.xlu1 %2613, %v1179_v27  }
 0x1d6   : > { %v627_v29 = vpop.f32.mrf.mxu0  ;;  %v1182_v30 = vld [vmem:[#allocation2 + $0xc8] sm:$0xff] }
 0x1d7   : > { %708 = vst.msk [vmem:[#allocation2 + $0xe8] sm:$0xff] %vm678_vm2, %v675_v28  ;;  %v674_v31 = vmul.f32 0.25, %v627_v29  ;;  %1316 = vperm.xlu0 %2614, %v1182_v30   ;;  %v719_v28 = vrot.slane %v718_v22, 2  ;;  %v726_v30 = vrot.slane %v725_v24, 2 }
 0x1d8   : > { %v2538_v32 = vpop.f32.mrf.mxu0  ;;  %v1181_v33 = vld [vmem:[#allocation2 + $0xc0] sm:$0xff] }
 0x1d9   : > { %707 = vst.msk [vmem:[#allocation2 + $0xe0] sm:$0xff] %vm678_vm2, %v674_v31  ;;  %v677_v34 = vmul.f32 0.25, %v2538_v32  ;;  %1311 = vperm.xlu1 %2613, %v1181_v33   ;;  %v720_v33 = vadd.f32 %v719_v28, %v718_v22 }
 0x1da   : > { %v637_v35 = vpop.f32.mrf.mxu0  ;;  %v1184_v36 = vld [vmem:[#allocation2 + $0xd8] sm:$0xff] }
 0x1db   : > { %710 = vst.msk [vmem:[#allocation2 + $0xf8] sm:$0xff] %vm678_vm2, %v677_v34  ;;  %v676_v37 = vmul.f32 0.25, %v637_v35  ;;  %1326 = vperm.xlu0 %2614, %v1184_v36   ;;  %v727_v35 = vadd.f32 %v726_v30, %v725_v24 }
 0x1dc   : > { %v1183_v38 = vld [vmem:[#allocation2 + $0xd0] sm:$0xff]  ;;  %v3176_v39 = vpop.f32.mrf.mxu1  ;;  %v966_v54 = vpop.f32.mrf.mxu0 }
 0x1dd   : > { %709 = vst.msk [vmem:[#allocation2 + $0xf0] sm:$0xff] %vm678_vm2, %v676_v37  ;;  %1321 = vperm.xlu1 %2613, %v1183_v38   ;;  %v721_v37 = vrot.slane %v720_v33, 1 }
 0x1de   : > { %v1186_v40 = vld [vmem:[#allocation2 + $0xe8] sm:$0xff]  ;;  %v3179_v41 = vpop.f32.mrf.mxu1  ;;  %v968_v57 = vpop.f32.mrf.mxu0 }
 0x1df   : > { %1336 = vperm.xlu0 %2614, %v1186_v40   ;;  %v3247_v12 = vadd.f32 %v721_v37, %v720_v33 }
 0x1e0   : > { %v1185_v42 = vld [vmem:[#allocation2 + $0xe0] sm:$0xff]  ;;  %v3181_v43 = vpop.f32.mrf.mxu1  ;;  %v972_v60 = vpop.f32.mrf.mxu0 }
 0x1e1   : > { %1331 = vperm.xlu1 %2613, %v1185_v42   ;;  %v728_v42 = vrot.slane %v727_v35, 1 }
 0x1e2   : > { %v1188_v44 = vld [vmem:[#allocation2 + $0xf8] sm:$0xff]  ;;  %v3183_v45 = vpop.f32.mrf.mxu1  ;;  %v974_v63 = vpop.f32.mrf.mxu0 }
 0x1e3   : > { %1346 = vperm.xlu0 %2614, %v1188_v44   ;;  %v3251_v19 = vadd.f32 %v728_v42, %v727_v35 }
 0x1e4   : > { %v1187_v46 = vld [vmem:[#allocation2 + $0xf0] sm:$0xff]  ;;  %v3185_v47 = vpop.f32.mrf.mxu1  ;;  %v978_v2 = vpop.f32.mrf.mxu0 }
 0x1e5   : > { %1341 = vperm.xlu1 %2613, %v1187_v46  }
 0x1e6   : > { %v3187_v48 = vpop.f32.mrf.mxu1  ;;  %v980_v6 = vpop.f32.mrf.mxu0 }
 0x1e8   : > { %v3189_v49 = vpop.f32.mrf.mxu1  ;;  %v984_v11 = vpop.f32.mrf.mxu0 }
 0x1ea   : > { %v3191_v50 = vpop.f32.mrf.mxu1  ;;  %v986_v16 = vpop.f32.mrf.mxu0 }
 0x1ec   : > { %v3193_v51 = vpop.f32.mrf.mxu1  ;;  %v990_v20 = vpop.f32.mrf.mxu0 }
 0x1ee   : > { %v3195_v52 = vpop.f32.mrf.mxu1  ;;  %v992_v25 = vpop.f32.mrf.mxu0 }
 0x1f0   : > { %v3197_v53 = vpop.f32.mrf.mxu1  ;;  %v996_v31 = vpop.f32.mrf.mxu0 }
 0x1f2   : > { %v3199_v55 = vpop.f32.mrf.mxu1  ;;  %v998_v36 = vpop.f32.mrf.mxu0 }
 0x1f4   : > { %v3201_v56 = vpop.f32.mrf.mxu1  ;;  %v1002_v46 = vpop.f32.mrf.mxu0 }
 0x1f6   : > { %v3203_v58 = vpop.f32.mrf.mxu1  ;;  %v1004_v30 = vpop.f32.mrf.mxu0 }
 0x1f8   : > { %v3205_v59 = vpop.f32.mrf.mxu1 }
 0x1fa   : > { %v3207_v61 = vpop.f32.mrf.mxu1 }
 0x1fc   : > { %v3209_v62 = vpop.f32.mrf.mxu1 }
 0x1fe   : > { %v3211_v0 = vpop.f32.mrf.mxu1 }
 0x200   : > { %v3213_v1 = vpop.f32.mrf.mxu1 }
 0x202   : > { %v3215_v3 = vpop.f32.mrf.mxu1 }
 0x204   : > { %v3217_v4 = vpop.f32.mrf.mxu1 }
 0x206   : > { %v3221_v9 = vpop.f32.mrf.mxu1  ;;  %v1197_v26 = vpop.permute.xlu1 %1196 }
 0x207   : > { %v1351_v5 = vadd.f32 %v1197_v26, %v972_v60  ;;  %v1352_v22 = vadd.f32 %v1197_v26, %v974_v63  ;;  %v1008_v63 = vpop.f32.mrf.mxu0 }
 0x208   : > { %v3223_v10 = vpop.f32.mrf.mxu1  ;;  %v1192_v44 = vpop.permute.xlu0 %1191 }
 0x209   : > { %v1349_v28 = vadd.f32 %v1192_v44, %v966_v54  ;;  %v3259_v35 = vadd.f32 %v1351_v5, %v3247_v12  ;;  %v3262_v60 = vadd.f32 %v1352_v22, %v3251_v19 }
 0x20a   : > { %v3225_v13 = vpop.f32.mrf.mxu1 }
 0x20b   : > { %v3265_v54 = vadd.f32 %v1349_v28, %v3247_v12 }
 0x20c   : > { %v3227_v14 = vpop.f32.mrf.mxu1 }
 0x20e   : > { %v3231_v18 = vpop.f32.mrf.mxu1  ;;  %v1207_v32 = vpop.permute.xlu1 %1206 }
 0x20f   : > { %4450 = vst [vmem:[#allocation13_spill] sm:$0xff] %v3231_v18  ;;  %v1355_v8 = vadd.f32 %v1207_v32, %v984_v11 }
 0x210   : > { %v3233_v7 = vpop.f32.mrf.mxu1 }
 0x212   : > { %v3235_v21 = vpop.f32.mrf.mxu1  ;;  %v1202_v38 = vpop.permute.xlu1 %1201 }
 0x214   : > { %v3237_v23 = vpop.f32.mrf.mxu1 }
 0x215   : > { %4451 = vst [vmem:[#allocation14_spill] sm:$0xff] %v3237_v23  ;;  %v1353_v23 = vadd.f32 %v1202_v38, %v978_v2 }
 0x216   : > { %v3239_v27 = vpop.f32.mrf.mxu1  ;;  %v1217_v24 = vpop.permute.xlu0 %1216 }
 0x217   : > { %4452 = vst [vmem:[#allocation15_spill] sm:$0xff] %v3239_v27  ;;  %v1356_v27 = vadd.f32 %v1207_v32, %v986_v16  ;;  %v1359_v11 = vadd.f32 %v1217_v24, %v996_v31  ;;  %v1360_v33 = vadd.f32 %v1217_v24, %v998_v36  ;;  %v3271_v2 = vadd.f32 %v1353_v23, %v3247_v12 }
 0x218   : > { %v3241_v29 = vpop.f32.mrf.mxu1  ;;  %v1212_v15 = vpop.permute.xlu1 %1211 }
 0x219   : > { %4453 = vst [vmem:[#allocation16_spill] sm:$0xff] %v3241_v29  ;;  %v1354_v29 = vadd.f32 %v1202_v38, %v980_v6  ;;  %v1357_v6 = vadd.f32 %v1212_v15, %v990_v20  ;;  %v3281_v36 = vadd.f32 %v1359_v11, %v3247_v12  ;;  %v3284_v38 = vadd.f32 %v1360_v33, %v3251_v19 }
 0x21a   : > { %v3243_v34 = vpop.f32.mrf.mxu1  ;;  %v4392_v20 = vmax.f32 %v3259_v35, 0.0 }
 0x21b   : > { %4454 = vst [vmem:[#allocation17_spill] sm:$0xff] %v3243_v34  ;;  %v1350_v34 = vadd.f32 %v1192_v44, %v968_v57  ;;  %v3268_v57 = vadd.f32 %v1356_v27, %v3251_v19  ;;  %v3278_v32 = vadd.f32 %v1354_v29, %v3251_v19  ;;  %4458 = vst [vmem:[#allocation21_spill] sm:$0xff] %v3281_v36 }
 0x21c   : > { %v3245_v40 = vpop.f32.mrf.mxu1  ;;  %v1358_v44 = vadd.f32 %v1212_v15, %v992_v25  ;;  %v3294_v22 = vadd.f32 %v1357_v6, %v3247_v12  ;;  %v4393_v15 = vmax.f32 %v3281_v36, 0.0 }
 0x21d   : > { %4455 = vst [vmem:[#allocation18_spill] sm:$0xff] %v3245_v40  ;;  %v3254_v40 = vadd.f32 %v1355_v8, %v3247_v12  ;;  %v3274_v26 = vadd.f32 %v1350_v34, %v3251_v19  ;;  %v1010_v8 = vpop.f32.mrf.mxu0  ;;  %v4394_v34 = vmax.f32 %v3278_v32, 0.0 }
 0x21e   : > { %v3249_v17 = vpop.f32.mrf.mxu1  ;;  %v1227_v16 = vpop.permute.xlu0 %1226 }
 0x21f   : > { %4456 = vst [vmem:[#allocation19_spill] sm:$0xff] %v3249_v17  ;;  %4457 = vst [vmem:[#allocation20_spill] sm:$0xff] %v3254_v40  ;;  %v4391_v31 = vmax.f32 %v3254_v40, 0.0  ;;  %v1363_v28 = vadd.f32 %v1227_v16, %v1008_v63  ;;  %v1364_v25 = vadd.f32 %v1227_v16, %v1010_v8  ;;  %v3307_v63 = vadd.f32 %v1358_v44, %v3251_v19 }
 0x220   : > { %v1222_v37 = vpop.permute.xlu1 %1221  ;;  %v3256_v18 = vpop.f32.mrf.mxu1  ;;  %v4459_v16 = vmax.f32 %v3268_v57, 0.0  ;;  %v4460_v8 = vmax.f32 %v3262_v60, 0.0 }
 0x221   : > { %v1542_v33 = vmin.f32 %v4392_v20, %v4391_v31  ;;  %v1361_v5 = vadd.f32 %v1222_v37, %v1002_v46  ;;  %v1362_v29 = vadd.f32 %v1222_v37, %v1004_v30  ;;  %v4461_v46 = vmax.f32 %v3271_v2, 0.0 }
 0x222   : > { %v3286_v42 = vpop.f32.mrf.mxu1  ;;  %v1579_v20 = vmin.f32 %v4460_v8, %v4459_v16  ;;  %v4462_v30 = vmax.f32 %v3265_v54, 0.0  ;;  %v3322_v44 = vadd.f32 %v1363_v28, %v3247_v12  ;;  %v4465_v8 = vmax.f32 %v3274_v26, 0.0 }
 0x223   : > { %v1544_v28 = vmin.f32 %v1542_v33, %v4393_v15  ;;  %v4469_v33 = vmax.f32 %v3294_v22, 0.0 }
 0x224   : > { %v3304_v17 = vpop.f32.mrf.mxu1  ;;  %v1541_v37 = vmin.f32 %v4462_v30, %v4461_v46  ;;  %4463 = vst [vmem:[#allocation22_spill] sm:$0xff] %v3322_v44  ;;  %v1578_v46 = vmin.f32 %v4465_v8, %v4394_v34  ;;  %v3339_v30 = vadd.f32 %v1361_v5, %v3247_v12 }
 0x226   : > { %v1237_v24 = vpop.permute.xlu0 %1236  ;;  %v1543_v5 = vmin.f32 %v1541_v37, %v4469_v33 }
 0x227   : > { %v1367_v11 = vadd.f32 %v1237_v24, %v3181_v43  ;;  %v1368_v40 = vadd.f32 %v1237_v24, %v3183_v45  ;;  %v3325_v45 = vadd.f32 %v1364_v25, %v3251_v19  ;;  %v3342_v25 = vadd.f32 %v1362_v29, %v3251_v19 }
 0x228   : > { %v1232_v27 = vpop.permute.xlu1 %1231 }
 0x229   : > { %4464 = vst [vmem:[#allocation23_spill] sm:$0xff] %v3325_v45  ;;  %v1366_v24 = vadd.f32 %v1232_v27, %v3179_v41  ;;  %v4466_v41 = vmax.f32 %v3284_v38, 0.0  ;;  %v3350_v23 = vadd.f32 %v1367_v11, %v3247_v12  ;;  %v3353_v8 = vadd.f32 %v1368_v40, %v3251_v19 }
 0x22a   : > { %v4472_v33 = vmax.f32 %v3325_v45, 0.0 }
 0x22b   : > { %4467 = vst [vmem:[#allocation24_spill] sm:$0xff] %v3350_v23  ;;  %4468 = vst [vmem:[#allocation25_spill] sm:$0xff] %v3353_v8  ;;  %v3366_v40 = vadd.f32 %v1366_v24, %v3251_v19 }
 0x22e   : > { %v1247_v43 = vpop.permute.xlu0 %1246 }
 0x22f   : > { %v1371_v15 = vadd.f32 %v1247_v43, %v3189_v49  ;;  %v1372_v29 = vadd.f32 %v1247_v43, %v3191_v50  ;;  %v4399_v43 = vmax.f32 %v3350_v23, 0.0 }
 0x230   : > { %v1242_v6 = vpop.permute.xlu1 %1241 }
 0x231   : > { %v1370_v31 = vadd.f32 %v1242_v6, %v3187_v48  ;;  %v1365_v48 = vadd.f32 %v1232_v27, %v3176_v39  ;;  %v3344_v39 = vpop.f32.mrf.mxu1  ;;  %v1369_v34 = vadd.f32 %v1242_v6, %v3185_v47  ;;  %v3381_v37 = vadd.f32 %v1371_v15, %v3247_v12 }
 0x233   : > { %v3330_v16 = vadd.f32 %v1370_v31, %v3251_v19  ;;  %v1581_v31 = vmin.f32 %v1579_v20, %v4466_v41  ;;  %v4396_v20 = vmax.f32 %v3322_v44, 0.0  ;;  %v3363_v11 = vadd.f32 %v1365_v48, %v3247_v12  ;;  %v3372_v6 = vpop.f32.mrf.mxu1 }
 0x234   : > { %v4470_v41 = vmax.f32 %v3307_v63, 0.0 }
 0x236   : > { %v1257_v36 = vpop.permute.xlu0 %1256  ;;  %v1580_v27 = vmin.f32 %v1578_v46, %v4470_v41 }
 0x237   : > { %v1375_v49 = vadd.f32 %v1257_v36, %v3197_v53  ;;  %v1376_v50 = vadd.f32 %v1257_v36, %v3199_v55  ;;  %v3384_v53 = vadd.f32 %v1372_v29, %v3251_v19  ;;  %v3387_v55 = vadd.f32 %v1369_v34, %v3247_v12 }
 0x238   : > { %v1252_v47 = vpop.permute.xlu1 %1251  ;;  %v1546_v36 = vmin.f32 %v1544_v28, %v4396_v20  ;;  %v3407_v28 = vpop.f32.mrf.mxu1 }
 0x239   : > { %v1373_v48 = vadd.f32 %v1252_v47, %v3193_v51  ;;  %v1374_v24 = vadd.f32 %v1252_v47, %v3195_v52  ;;  %4471 = vst [vmem:[#allocation26_spill] sm:$0xff] %v3384_v53  ;;  %v1583_v51 = vmin.f32 %v1581_v31, %v4472_v33  ;;  %v3396_v46 = vadd.f32 %v1375_v49, %v3247_v12 }
 0x23a   : > { %v3399_v15 = vadd.f32 %v1376_v50, %v3251_v19  ;;  %v4477_v31 = vmax.f32 %v3339_v30, 0.0  ;;  %v4478_v33 = vmax.f32 %v3342_v25, 0.0  ;;  %v1548_v49 = vmin.f32 %v1546_v36, %v4399_v43 }
 0x23b   : > { %4473 = vst [vmem:[#allocation27_spill] sm:$0xff] %v3396_v46  ;;  %v3402_v29 = vadd.f32 %v1373_v48, %v3247_v12  ;;  %v3405_v34 = vadd.f32 %v1374_v24, %v3251_v19  ;;  %v4479_v50 = vmax.f32 %v3353_v8, 0.0  ;;  %v3431_v48 = vpop.f32.mrf.mxu1  ;;  %v4486_v24 = vmax.f32 %v3387_v55, 0.0 }
 0x23c   : > { %4474 = vst [vmem:[#allocation28_spill] sm:$0xff] %v3399_v15  ;;  %v1545_v41 = vmin.f32 %v1543_v5, %v4477_v31  ;;  %v1582_v20 = vmin.f32 %v1580_v27, %v4478_v33  ;;  %v4480_v5 = vmax.f32 %v3363_v11, 0.0  ;;  %v4481_v27 = vmax.f32 %v3366_v40, 0.0 }
 0x23d   : > { %4475 = vst [vmem:[#allocation29_spill] sm:$0xff] %v3402_v29  ;;  %4476 = vst [vmem:[#allocation30_spill] sm:$0xff] %v3405_v34  ;;  %v1585_v47 = vmin.f32 %v1583_v51, %v4479_v50  ;;  %v4487_v51 = vmax.f32 %v3330_v16, 0.0  ;;  %v4493_v23 = vmax.f32 %v3405_v34, 0.0 }
 0x23e   : > { %v1267_v44 = vpop.permute.xlu0 %1266  ;;  %v1547_v31 = vmin.f32 %v1545_v41, %v4480_v5  ;;  %v1584_v33 = vmin.f32 %v1582_v20, %v4481_v27  ;;  %v4485_v27 = vmax.f32 %v3384_v53, 0.0 }
 0x23f   : > { %v1379_v36 = vadd.f32 %v1267_v44, %v3205_v59  ;;  %v1380_v43 = vadd.f32 %v1267_v44, %v3207_v61  ;;  %v4484_v44 = vmax.f32 %v3381_v37, 0.0 }
 0x240   : > { %v1262_v45 = vpop.permute.xlu1 %1261  ;;  %v1587_v52 = vmin.f32 %v1585_v47, %v4485_v27  ;;  %v1549_v50 = vmin.f32 %v1547_v31, %v4486_v24  ;;  %v4492_v27 = vmax.f32 %v3402_v29, 0.0 }
 0x241   : > { %v3434_v41 = vadd.f32 %v1379_v36, %v3247_v12  ;;  %v3437_v20 = vadd.f32 %v1380_v43, %v3251_v19  ;;  %v1377_v59 = vadd.f32 %v1262_v45, %v3201_v56  ;;  %v1378_v61 = vadd.f32 %v1262_v45, %v3203_v58 }
 0x242   : > { %v1550_v5 = vmin.f32 %v1548_v49, %v4484_v44  ;;  %v1586_v36 = vmin.f32 %v1584_v33, %v4487_v51  ;;  %v1277_v8 = vpop.permute.xlu0 %1276  ;;  %v4490_v45 = vmax.f32 %v3396_v46, 0.0  ;;  %v4491_v49 = vmax.f32 %v3399_v15, 0.0  ;;  %v3463_v44 = vpop.f32.mrf.mxu1 }
 0x243   : > { %4482 = vst [vmem:[#allocation31_spill] sm:$0xff] %v3434_v41  ;;  %4483 = vst [vmem:[#allocation32_spill] sm:$0xff] %v3437_v20  ;;  %v3452_v56 = vadd.f32 %v1377_v59, %v3247_v12  ;;  %v3455_v58 = vadd.f32 %v1378_v61, %v3251_v19  ;;  %v1383_v31 = vadd.f32 %v1277_v8, %v3213_v1 }
 0x244   : > { %v1552_v47 = vmin.f32 %v1550_v5, %v4490_v45  ;;  %v1589_v24 = vmin.f32 %v1587_v52, %v4491_v49  ;;  %v1384_v33 = vadd.f32 %v1277_v8, %v3215_v3  ;;  %v1272_v51 = vpop.permute.xlu1 %1271  ;;  %v1551_v59 = vmin.f32 %v1549_v50, %v4492_v27 }
 0x245   : > { %4488 = vst [vmem:[#allocation33_spill] sm:$0xff] %v3452_v56  ;;  %4489 = vst [vmem:[#allocation34_spill] sm:$0xff] %v3455_v58  ;;  %v1588_v61 = vmin.f32 %v1586_v36, %v4493_v23  ;;  %v3472_v45 = vadd.f32 %v1383_v31, %v3247_v12  ;;  %v1381_v3 = vadd.f32 %v1272_v51, %v3209_v62  ;;  %v4496_v50 = vmax.f32 %v3434_v41, 0.0  ;;  %v4514_v41 = vld [vmem:[#allocation16_spill] sm:$0xff] }
 0x246   : > { %v3475_v1 = vadd.f32 %v1384_v33, %v3251_v19  ;;  %v1382_v8 = vadd.f32 %v1272_v51, %v3211_v0  ;;  %v1287_v52 = vpop.permute.xlu0 %1286  ;;  %v4497_v23 = vmax.f32 %v3437_v20, 0.0  ;;  %v3493_v51 = vpop.f32.mrf.mxu1 }
 0x247   : > { %4494 = vst [vmem:[#allocation35_spill] sm:$0xff] %v3472_v45  ;;  %v1554_v49 = vmin.f32 %v1552_v47, %v4496_v50  ;;  %v1387_v27 = vadd.f32 %v1287_v52, %v3223_v10  ;;  %v1388_v5 = vadd.f32 %v1287_v52, %v3225_v13  ;;  %v3488_v43 = vadd.f32 %v1381_v3, %v3247_v12 }
 0x248   : > { %4495 = vst [vmem:[#allocation36_spill] sm:$0xff] %v3475_v1  ;;  %v1591_v36 = vmin.f32 %v1589_v24, %v4497_v23  ;;  %v3491_v62 = vadd.f32 %v1382_v8, %v3251_v19  ;;  %v1282_v0 = vpop.permute.xlu1 %1281  ;;  %v4502_v52 = vmax.f32 %v3452_v56, 0.0  ;;  %v4503_v50 = vmax.f32 %v3455_v58, 0.0 }
 0x249   : > { %4498 = vst [vmem:[#allocation37_spill] sm:$0xff] %v3488_v43  ;;  %v3496_v47 = vadd.f32 %v1387_v27, %v3247_v12  ;;  %v3499_v10 = vadd.f32 %v1388_v5, %v3251_v19  ;;  %v1385_v13 = vadd.f32 %v1282_v0, %v3217_v4  ;;  %v1386_v24 = vadd.f32 %v1282_v0, %v3221_v9  ;;  %v3523_v27 = vpop.f32.mrf.mxu1 }
 0x24a   : > { %4499 = vst [vmem:[#allocation38_spill] sm:$0xff] %v3491_v62  ;;  %v1553_v3 = vmin.f32 %v1551_v59, %v4502_v52  ;;  %v1590_v8 = vmin.f32 %v1588_v61, %v4503_v50  ;;  %v4404_v23 = vmax.f32 %v3488_v43, 0.0  ;;  %v1297_v31 = vpop.permute.xlu0 %1296  ;;  %v4506_v9 = vmax.f32 %v3472_v45, 0.0 }
 0x24b   : > { %4500 = vst [vmem:[#allocation39_spill] sm:$0xff] %v3496_v47  ;;  %4501 = vst [vmem:[#allocation40_spill] sm:$0xff] %v3499_v10  ;;  %v3512_v20 = vadd.f32 %v1385_v13, %v3247_v12  ;;  %v3515_v4 = vadd.f32 %v1386_v24, %v3251_v19  ;;  %v4507_v61 = vmax.f32 %v3475_v1, 0.0  ;;  %v1391_v52 = vadd.f32 %v1297_v31, %v3233_v7 }
 0x24c   : > { %v1556_v59 = vmin.f32 %v1554_v49, %v4506_v9  ;;  %v1392_v50 = vadd.f32 %v1297_v31, %v3235_v21  ;;  %v1292_v33 = vpop.permute.xlu1 %1291  ;;  %v1555_v13 = vmin.f32 %v1553_v3, %v4404_v23  ;;  %v4508_v5 = vmax.f32 %v3491_v62, 0.0  ;;  %v4515_v49 = vld [vmem:[#allocation17_spill] sm:$0xff] }
 0x24d   : > { %4504 = vst [vmem:[#allocation41_spill] sm:$0xff] %v3512_v20  ;;  %4505 = vst [vmem:[#allocation42_spill] sm:$0xff] %v3515_v4  ;;  %v1593_v0 = vmin.f32 %v1591_v36, %v4507_v61  ;;  %v3532_v9 = vadd.f32 %v1391_v52, %v3247_v12  ;;  %v1389_v21 = vadd.f32 %v1292_v33, %v3227_v14  ;;  %v4511_v36 = vld [vmem:[#allocation13_spill] sm:$0xff]  ;;  %v4512_v3 = vmax.f32 %v3496_v47, 0.0 }
 0x24e   : > { %v1592_v24 = vmin.f32 %v1590_v8, %v4508_v5  ;;  %v3535_v7 = vadd.f32 %v1392_v50, %v3251_v19  ;;  %v1390_v31 = vadd.f32 %v1292_v33, %v4511_v36  ;;  %v1307_v61 = vpop.permute.xlu0 %1306  ;;  %v4513_v8 = vmax.f32 %v3499_v10, 0.0  ;;  %v3553_v36 = vpop.f32.mrf.mxu1 }
 0x24f   : > { %4509 = vst [vmem:[#allocation43_spill] sm:$0xff] %v3532_v9  ;;  %v1558_v23 = vmin.f32 %v1556_v59, %v4512_v3  ;;  %v1395_v1 = vadd.f32 %v1307_v61, %v4514_v41  ;;  %v1396_v45 = vadd.f32 %v1307_v61, %v4515_v49  ;;  %v3548_v62 = vadd.f32 %v1389_v21, %v3247_v12  ;;  %v4517_v61 = vld [vmem:[#allocation15_spill] sm:$0xff] }
 0x250   : > { %4510 = vst [vmem:[#allocation44_spill] sm:$0xff] %v3535_v7  ;;  %v1595_v5 = vmin.f32 %v1593_v0, %v4513_v8  ;;  %v3551_v14 = vadd.f32 %v1390_v31, %v3251_v19  ;;  %v1302_v33 = vpop.permute.xlu1 %1301  ;;  %v4516_v0 = vld [vmem:[#allocation14_spill] sm:$0xff]  ;;  %v4518_v8 = vmax.f32 %v3512_v20, 0.0  ;;  %v4519_v50 = vmax.f32 %v3515_v4, 0.0 }
 0x251   : > { %v3556_v59 = vadd.f32 %v1395_v1, %v3247_v12  ;;  %v3559_v41 = vadd.f32 %v1396_v45, %v3251_v19  ;;  %v1393_v49 = vadd.f32 %v1302_v33, %v4516_v0  ;;  %v1394_v3 = vadd.f32 %v1302_v33, %v4517_v61  ;;  %v1148_v1 = vpop.f32.mrf.mxu1 }
 0x252   : > { %v1557_v21 = vmin.f32 %v1555_v13, %v4518_v8  ;;  %v1594_v31 = vmin.f32 %v1592_v24, %v4519_v50  ;;  %v4413_v52 = vmax.f32 %v3548_v62, 0.0  ;;  %v1317_v47 = vpop.permute.xlu0 %1316  ;;  %v4520_v13 = vmax.f32 %v3532_v9, 0.0 }
 0x253   : > { %v3572_v43 = vadd.f32 %v1393_v49, %v3247_v12  ;;  %v3575_v33 = vadd.f32 %v1394_v3, %v3251_v19  ;;  %v4521_v24 = vmax.f32 %v3535_v7, 0.0  ;;  %v1399_v61 = vadd.f32 %v1317_v47, %v3256_v18  ;;  %v4523_v18 = vld [vmem:[#allocation18_spill] sm:$0xff] }
 0x254   : > { %v1560_v0 = vmin.f32 %v1558_v23, %v4520_v13  ;;  %v1400_v8 = vadd.f32 %v1317_v47, %v3286_v42  ;;  %v1312_v10 = vpop.permute.xlu1 %1311  ;;  %v1559_v45 = vmin.f32 %v1557_v21, %v4413_v52  ;;  %v4522_v49 = vmax.f32 %v3551_v14, 0.0  ;;  %v4524_v47 = vld [vmem:[#allocation19_spill] sm:$0xff] }
 0x255   : > { %v1597_v50 = vmin.f32 %v1595_v5, %v4521_v24  ;;  %v3590_v23 = vadd.f32 %v1399_v61, %v3247_v12  ;;  %v1397_v42 = vadd.f32 %v1312_v10, %v4523_v18  ;;  %v1398_v13 = vadd.f32 %v1312_v10, %v4524_v47  ;;  %v1152_v47 = vpop.f32.mrf.mxu1 }
 0x256   : > { %v1596_v4 = vmin.f32 %v1594_v31, %v4522_v49  ;;  %v3593_v5 = vadd.f32 %v1400_v8, %v3251_v19  ;;  %v1327_v24 = vpop.permute.xlu0 %1326  ;;  %v4525_v21 = vmax.f32 %v3556_v59, 0.0  ;;  %v4526_v31 = vmax.f32 %v3559_v41, 0.0 }
 0x257   : > { %v1403_v3 = vadd.f32 %v1327_v24, %v3372_v6  ;;  %v1404_v9 = vadd.f32 %v1327_v24, %v3407_v28  ;;  %v3606_v7 = vadd.f32 %v1397_v42, %v3247_v12  ;;  %v3609_v10 = vadd.f32 %v1398_v13, %v3251_v19 }
 0x258   : > { %v1562_v52 = vmin.f32 %v1560_v0, %v4525_v21  ;;  %v1599_v49 = vmin.f32 %v1597_v50, %v4526_v31  ;;  %v1322_v18 = vpop.permute.xlu1 %1321  ;;  %v4527_v24 = vmax.f32 %v3572_v43, 0.0  ;;  %v4528_v42 = vmax.f32 %v3575_v33, 0.0 }
 0x259   : > { %v3612_v0 = vadd.f32 %v1403_v3, %v3247_v12  ;;  %v3615_v50 = vadd.f32 %v1404_v9, %v3251_v19  ;;  %v1401_v6 = vadd.f32 %v1322_v18, %v3304_v17  ;;  %v1402_v28 = vadd.f32 %v1322_v18, %v3344_v39  ;;  %v1154_v3 = vpop.f32.mrf.mxu1 }
 0x25a   : > { %v1561_v21 = vmin.f32 %v1559_v45, %v4527_v24  ;;  %v1598_v31 = vmin.f32 %v1596_v4, %v4528_v42  ;;  %v4418_v13 = vmax.f32 %v3606_v7, 0.0  ;;  %v1337_v61 = vpop.permute.xlu0 %1336  ;;  %v4529_v39 = vmax.f32 %v3590_v23, 0.0 }
 0x25b   : > { %v3628_v20 = vadd.f32 %v1401_v6, %v3247_v12  ;;  %v3631_v17 = vadd.f32 %v1402_v28, %v3251_v19  ;;  %v4530_v4 = vmax.f32 %v3593_v5, 0.0  ;;  %v1407_v24 = vadd.f32 %v1337_v61, %v3493_v51 }
 0x25c   : > { %v1564_v45 = vmin.f32 %v1562_v52, %v4529_v39  ;;  %v1408_v42 = vadd.f32 %v1337_v61, %v3523_v27  ;;  %v1332_v8 = vpop.permute.xlu1 %1331  ;;  %v1563_v9 = vmin.f32 %v1561_v21, %v4418_v13  ;;  %v4531_v6 = vmax.f32 %v3609_v10, 0.0 }
 0x25d   : > { %v1601_v18 = vmin.f32 %v1599_v49, %v4530_v4  ;;  %v4419_v28 = vmax.f32 %v3628_v20, 0.0  ;;  %v3646_v52 = vadd.f32 %v1407_v24, %v3247_v12  ;;  %v1405_v51 = vadd.f32 %v1332_v8, %v3431_v48 }
 0x25e   : > { %v1600_v58 = vmin.f32 %v1598_v31, %v4531_v6  ;;  %v3649_v49 = vadd.f32 %v1408_v42, %v3251_v19  ;;  %v1406_v27 = vadd.f32 %v1332_v8, %v3463_v44  ;;  %v1347_v61 = vpop.permute.xlu0 %1346  ;;  %v4532_v21 = vmax.f32 %v3612_v0, 0.0 }
 0x25f   : > { %v4533_v31 = vmax.f32 %v3615_v50, 0.0  ;;  %v1411_v6 = vadd.f32 %v1347_v61, %v1152_v47  ;;  %v1412_v13 = vadd.f32 %v1347_v61, %v1154_v3  ;;  %v4424_v56 = vmax.f32 %v3646_v52, 0.0 }
 0x260   : > { %v1566_v39 = vmin.f32 %v1564_v45, %v4532_v21  ;;  %v3660_v42 = vadd.f32 %v1405_v51, %v3247_v12  ;;  %v3663_v48 = vadd.f32 %v1406_v27, %v3251_v19  ;;  %v1342_v44 = vpop.permute.xlu1 %1341  ;;  %v4534_v61 = vmax.f32 %v3631_v17, 0.0 }
 0x261   : > { %v1603_v4 = vmin.f32 %v1601_v18, %v4533_v31  ;;  %v3666_v8 = vadd.f32 %v1411_v6, %v3247_v12  ;;  %v3669_v45 = vadd.f32 %v1412_v13, %v3251_v19  ;;  %v1409_v47 = vadd.f32 %v1342_v44, %v3553_v36 }
 0x262   : > { %v1410_v3 = vadd.f32 %v1342_v44, %v1148_v1  ;;  %v1565_v18 = vmin.f32 %v1563_v9, %v4419_v28  ;;  %v1602_v51 = vmin.f32 %v1600_v58, %v4534_v61  ;;  %v1533_v21 = vmax.f32 %v3660_v42, 0.0 }
 0x263   : > { %v1534_v27 = vmax.f32 %v3663_v48, 0.0  ;;  %v1539_v31 = vmax.f32 %v3666_v8, 0.0  ;;  %v1540_v6 = vmax.f32 %v3669_v45, 0.0  ;;  %v1473_v13 = vadd.f32 %v1409_v47, %v3247_v12 }
 0x264   : > { %v1474_v24 = vadd.f32 %v1410_v3, %v3251_v19  ;;  %v1568_v36 = vmin.f32 %v1566_v39, %v4424_v56  ;;  %v4535_v1 = vmax.f32 %v3649_v49, 0.0  ;;  %v1567_v44 = vmin.f32 %v1565_v18, %v1533_v21 }
 0x265   : > { %v1604_v58 = vmin.f32 %v1602_v51, %v1534_v27  ;;  %v1537_v61 = vmax.f32 %v1473_v13, 0.0 }
 0x266   : > { %v1605_v9 = vmin.f32 %v1603_v4, %v4535_v1  ;;  %v1538_v42 = vmax.f32 %v1474_v24, 0.0  ;;  %v1570_v28 = vmin.f32 %v1568_v36, %v1539_v31 }
 0x267   : > { %v1569_v15 = vmin.f32 %v1567_v44, %v1537_v61  ;;  %v4539_v44 = vmax.f32 %v3259_v35, 0.0  ;;  %v4544_v35 = vmax.f32 %v3572_v43, 0.0  ;;  %v4548_v43 = vmax.f32 %v3606_v7, 0.0 }
 0x268   : > { %v1607_v48 = vmin.f32 %v1605_v9, %v1540_v6  ;;  %v1606_v8 = vmin.f32 %v1604_v58, %v1538_v42  ;;  %v4552_v7 = vmax.f32 %v3628_v20, 0.0 }
 0x269   : > { %v1571_v46 = vmin.f32 %v1569_v15, %v1570_v28 }
 0x26a   : > { %v1608_v45 = vmin.f32 %v1606_v8, %v1607_v48  ;;  %v4540_v48 = vmax.f32 %v3274_v26, 0.0 }
 0x26b   : > { %v1572_v34 = vrot.slane %v1571_v46, 4 }
 0x26c   : > { %v1609_v12 = vrot.slane %v1608_v45, 4 }
 0x26d   : > { %v1573_v47 = vmin.f32 %v1571_v46, %v1572_v34  ;;  %v4536_v46 = vmax.f32 %v3271_v2, 0.0  ;;  %v4541_v2 = vmax.f32 %v3262_v60, 0.0 }
 0x26e   : > { %v1610_v19 = vmin.f32 %v1608_v45, %v1609_v12 }
 0x26f   : > { %v1574_v3 = vrot.slane %v1573_v47, 2 }
 0x270   : > { %v1611_v29 = vrot.slane %v1610_v19, 2 }
 0x271   : > { %v1575_v39 = vmin.f32 %v1573_v47, %v1574_v3 }
 0x272   : > { %v1612_v56 = vmin.f32 %v1610_v19, %v1611_v29  ;;  %v4537_v29 = vmax.f32 %v3278_v32, 0.0  ;;  %v4542_v32 = vmax.f32 %v3548_v62, 0.0  ;;  %v4545_v19 = vmax.f32 %v3575_v33, 0.0 }
 0x273   : > { %v1576_v53 = vrot.slane %v1575_v39, 1  ;;  %v4546_v62 = vmax.f32 %v3556_v59, 0.0  ;;  %v4549_v33 = vmax.f32 %v3609_v10, 0.0  ;;  %v4550_v59 = vmax.f32 %v3590_v23, 0.0 }
 0x274   : > { %v1613_v4 = vrot.slane %v1612_v56, 1  ;;  %v4553_v10 = vmax.f32 %v3631_v17, 0.0  ;;  %v4554_v23 = vmax.f32 %v3612_v0, 0.0  ;;  %v4556_v17 = vmax.f32 %v3646_v52, 0.0 }
 0x275   : > { %v1577_v18 = vmin.f32 %v1575_v39, %v1576_v53  ;;  %v4538_v53 = vmax.f32 %v3265_v54, 0.0  ;;  %v4543_v54 = vmax.f32 %v3551_v14, 0.0  ;;  %v4547_v14 = vmax.f32 %v3559_v41, 0.0 }
 0x276   : > { %v1614_v51 = vmin.f32 %v1612_v56, %v1613_v4  ;;  %v4551_v41 = vmax.f32 %v3593_v5, 0.0  ;;  %v4555_v5 = vmax.f32 %v3615_v50, 0.0  ;;  %v4557_v0 = vmax.f32 %v3649_v49, 0.0  ;;  %v4558_v49 = vld [vmem:[#allocation20_spill] sm:$0xff] }
 0x277   : > { %v1615_v13 = vadd.f32 1e-05, %v1577_v18 }
 0x278   : > { %v1616_v24 = vadd.f32 1e-05, %v1614_v51 }
 0x279   : > { %2617 = vrcp.f32 %v1615_v13 }
 0x27a   : > { %2619 = vrcp.f32 %v1616_v24 }
 0x286   : > { %v2618_v36 = vpop.eup %2617 }
 0x287   : > { %v2620_v1 = vpop.eup %2619  ;;  %v3686_v15 = vsub.f32 0.0, %v2618_v36 }
 0x288   : > { %v3688_v28 = vsub.f32 0.0, %v2620_v1 }
 0x289   : > { %v1625_v34 = vmul.f32 %v3686_v15, %v4536_v46  ;;  %v1621_v56 = vmul.f32 %v3686_v15, %v4538_v53  ;;  %v1623_v58 = vmul.f32 %v3686_v15, %v4539_v44  ;;  %v3711_v12 = vmul.f32 %v3686_v15, %v4542_v32 }
 0x28a   : > { %v1626_v9 = vmul.f32 %v3688_v28, %v4537_v29  ;;  %v1622_v8 = vmul.f32 %v3688_v28, %v4540_v48  ;;  %v1624_v45 = vmul.f32 %v3688_v28, %v4541_v2  ;;  %v3716_v47 = vmul.f32 %v3688_v28, %v4543_v54 }
 0x28b   : > { %v3721_v26 = vmul.f32 %v3686_v15, %v4544_v35  ;;  %v3726_v60 = vmul.f32 %v3688_v28, %v4545_v19  ;;  %v3731_v3 = vmul.f32 %v3686_v15, %v4546_v62  ;;  %v3736_v39 = vmul.f32 %v3688_v28, %v4547_v14 }
 0x28c   : > { %v3741_v4 = vmul.f32 %v3686_v15, %v4548_v43  ;;  %v3746_v18 = vmul.f32 %v3688_v28, %v4549_v33  ;;  %v3751_v51 = vmul.f32 %v3686_v15, %v4550_v59  ;;  %v3756_v13 = vmul.f32 %v3688_v28, %v4551_v41 }
 0x28d   : > { %v3761_v24 = vmul.f32 %v3686_v15, %v4552_v7  ;;  %v3766_v36 = vmul.f32 %v3688_v28, %v4553_v10  ;;  %v3771_v1 = vmul.f32 %v3686_v15, %v4554_v23  ;;  %v3776_v46 = vmul.f32 %v3688_v28, %v4555_v5  ;;  %v4568_v23 = vld [vmem:[#allocation22_spill] sm:$0xff] }
 0x28e   : > { %v3779_v20 = vmul.f32 %v3686_v15, %v1533_v21  ;;  %v3782_v29 = vmul.f32 %v3688_v28, %v1534_v27  ;;  %v3787_v53 = vmul.f32 %v3686_v15, %v4556_v17  ;;  %v3792_v44 = vmul.f32 %v3688_v28, %v4557_v0  ;;  %v4570_v0 = vld [vmem:[#allocation23_spill] sm:$0xff] }
 0x28f   : > { %v3795_v50 = vmul.f32 %v3686_v15, %v1537_v61  ;;  %v3798_v48 = vmul.f32 %v3688_v28, %v1538_v42  ;;  %v3801_v21 = vmul.f32 %v3686_v15, %v1539_v31  ;;  %v3804_v27 = vmul.f32 %v3688_v28, %v1540_v6 }
 0x290   : > { %v1685_v52 = vmul.f32 1.442695, %v1621_v56  ;;  %v1687_v2 = vmul.f32 1.442695, %v1622_v8  ;;  %v1689_v32 = vmul.f32 1.442695, %v1623_v58 }
 0x291   : > { %v1691_v54 = vmul.f32 1.442695, %v1624_v45  ;;  %v4559_v35 = vmax.f32 %v4558_v49, 0.0  ;;  %v4560_v61 = vmax.f32 %v3268_v57, 0.0  ;;  %v4561_v31 = vmax.f32 %v3294_v22, 0.0  ;;  %v4563_v45 = vld [vmem:[#allocation21_spill] sm:$0xff] }
 0x292   : > { %2621 = vpow2.f32 %v1685_v52  ;;  %v1693_v6 = vmul.f32 1.442695, %v1625_v34  ;;  %v4562_v56 = vmax.f32 %v3307_v63, 0.0  ;;  %v1695_v8 = vmul.f32 1.442695, %v1626_v9 }
 0x293   : > { %v1627_v19 = vmul.f32 %v3686_v15, %v4559_v35  ;;  %v1628_v42 = vmul.f32 %v3688_v28, %v4560_v61  ;;  %2623 = vpow2.f32 %v1687_v2  ;;  %v1629_v62 = vmul.f32 %v3686_v15, %v4561_v31  ;;  %v4574_v61 = vld [vmem:[#allocation24_spill] sm:$0xff] }
 0x294   : > { %2625 = vpow2.f32 %v1689_v32  ;;  %v1630_v58 = vmul.f32 %v3688_v28, %v4562_v56  ;;  %v4564_v14 = vmax.f32 %v4563_v45, 0.0  ;;  %v4565_v33 = vmax.f32 %v3284_v38, 0.0  ;;  %v4576_v56 = vld [vmem:[#allocation25_spill] sm:$0xff] }
 0x295   : > { %2627 = vpow2.f32 %v1691_v54  ;;  %v1697_v57 = vmul.f32 1.442695, %v1627_v19  ;;  %v1699_v22 = vmul.f32 1.442695, %v1628_v42  ;;  %v4566_v41 = vmax.f32 %v3339_v30, 0.0 }
 0x296   : > { %v1631_v43 = vmul.f32 %v3686_v15, %v4564_v14  ;;  %v1632_v59 = vmul.f32 %v3688_v28, %v4565_v33  ;;  %2629 = vpow2.f32 %v1693_v6  ;;  %v1701_v63 = vmul.f32 1.442695, %v1629_v62 }
 0x297   : > { %v1633_v34 = vmul.f32 %v3686_v15, %v4566_v41  ;;  %v4567_v7 = vmax.f32 %v3342_v25, 0.0  ;;  %2631 = vpow2.f32 %v1695_v8  ;;  %v1703_v10 = vmul.f32 1.442695, %v1630_v58 }
 0x298   : > { %v4569_v5 = vmax.f32 %v4568_v23, 0.0  ;;  %2633 = vpow2.f32 %v1697_v57  ;;  %v1705_v38 = vmul.f32 1.442695, %v1631_v43  ;;  %v4571_v52 = vmax.f32 %v4570_v0, 0.0 }
 0x299   : > { %v1634_v9 = vmul.f32 %v3688_v28, %v4567_v7  ;;  %2635 = vpow2.f32 %v1699_v22  ;;  %v1707_v2 = vmul.f32 1.442695, %v1632_v59  ;;  %v4572_v32 = vmax.f32 %v3363_v11, 0.0  ;;  %v4581_v7 = vld [vmem:[#allocation26_spill] sm:$0xff] }
 0x29a   : > { %v1635_v17 = vmul.f32 %v3686_v15, %v4569_v5  ;;  %v1636_v30 = vmul.f32 %v3688_v28, %v4571_v52  ;;  %2637 = vpow2.f32 %v1701_v63  ;;  %v1709_v54 = vmul.f32 1.442695, %v1633_v34  ;;  %v4583_v5 = vld [vmem:[#allocation29_spill] sm:$0xff] }
 0x29b   : > { %v1637_v25 = vmul.f32 %v3686_v15, %v4572_v32  ;;  %v4573_v49 = vmax.f32 %v3366_v40, 0.0  ;;  %2639 = vpow2.f32 %v1703_v10  ;;  %v1711_v19 = vmul.f32 1.442695, %v1634_v9 }
 0x29c   : > { %v4575_v42 = vmax.f32 %v4574_v61, 0.0  ;;  %2641 = vpow2.f32 %v1705_v38  ;;  %v1713_v62 = vmul.f32 1.442695, %v1635_v17  ;;  %v4577_v11 = vmax.f32 %v4576_v56, 0.0  ;;  %v4585_v38 = vld [vmem:[#allocation30_spill] sm:$0xff]  ;;  %v4589_v61 = vld [vmem:[#allocation28_spill] sm:$0xff] }
 0x29d   : > { %v1638_v35 = vmul.f32 %v3688_v28, %v4573_v49  ;;  %2643 = vpow2.f32 %v1707_v2  ;;  %v1715_v8 = vmul.f32 1.442695, %v1636_v30  ;;  %v4578_v40 = vmax.f32 %v3387_v55, 0.0  ;;  %v4587_v49 = vld [vmem:[#allocation27_spill] sm:$0xff] }
 0x29e   : > { %v1639_v31 = vmul.f32 %v3686_v15, %v4575_v42  ;;  %v1640_v58 = vmul.f32 %v3688_v28, %v4577_v11  ;;  %2645 = vpow2.f32 %v1709_v54  ;;  %v1717_v43 = vmul.f32 1.442695, %v1637_v25 }
 0x29f   : > { %v3845_v6 = vpop.eup %2621  ;;  %v1641_v14 = vmul.f32 %v3686_v15, %v4578_v40  ;;  %v4579_v33 = vmax.f32 %v3330_v16, 0.0  ;;  %2647 = vpow2.f32 %v1711_v19  ;;  %v1719_v22 = vmul.f32 1.442695, %v1638_v35 }
 0x2a0   : > { %v3850_v45 = vpop.eup %2623  ;;  %v4580_v34 = vmax.f32 %v3381_v37, 0.0  ;;  %2649 = vpow2.f32 %v1713_v62  ;;  %v1721_v55 = vmul.f32 1.442695, %v1639_v31  ;;  %v4582_v9 = vmax.f32 %v4581_v7, 0.0 }
 0x2a1   : > { %v3855_v57 = vpop.eup %2625  ;;  %v1642_v59 = vmul.f32 %v3688_v28, %v4579_v33  ;;  %2651 = vpow2.f32 %v1715_v8  ;;  %v1723_v23 = vmul.f32 1.442695, %v1640_v58  ;;  %v4584_v16 = vmax.f32 %v4583_v5, 0.0  ;;  %v4595_v5 = vld [vmem:[#allocation31_spill] sm:$0xff] }
 0x2a2   : > { %v3860_v41 = vpop.eup %2627  ;;  %v1643_v63 = vmul.f32 %v3686_v15, %v4580_v34  ;;  %v1644_v10 = vmul.f32 %v3688_v28, %v4582_v9  ;;  %v4586_v0 = vmax.f32 %v4585_v38, 0.0  ;;  %2653 = vpow2.f32 %v1717_v43 }
 0x2a3   : > { %v1645_v17 = vmul.f32 %v3686_v15, %v4584_v16  ;;  %v1725_v37 = vmul.f32 1.442695, %v1641_v14  ;;  %v3874_v30 = vpop.eup %2629  ;;  %2655 = vpow2.f32 %v1719_v22  ;;  %v1727_v2 = vmul.f32 1.442695, %v1642_v59  ;;  %v4591_v14 = vld [vmem:[#allocation33_spill] sm:$0xff]  ;;  %v4593_v59 = vld [vmem:[#allocation34_spill] sm:$0xff] }
 0x2a4   : > { %v1646_v52 = vmul.f32 %v3688_v28, %v4586_v0  ;;  %v1813_v32 = vadd.f32 %v3855_v57, %v3845_v6  ;;  %v1850_v25 = vadd.f32 %v3860_v41, %v3850_v45  ;;  %v3880_v54 = vpop.eup %2631  ;;  %v4588_v35 = vmax.f32 %v4587_v49, 0.0  ;;  %v4597_v0 = vld [vmem:[#allocation32_spill] sm:$0xff] }
 0x2a5   : > { %v4590_v42 = vmax.f32 %v4589_v61, 0.0  ;;  %2657 = vpow2.f32 %v1721_v55  ;;  %v1729_v62 = vmul.f32 1.442695, %v1643_v63  ;;  %v3888_v56 = vpop.eup %2633  ;;  %v1731_v11 = vmul.f32 1.442695, %v1644_v10  ;;  %v4599_v61 = vld [vmem:[#allocation37_spill] sm:$0xff] }
 0x2a6   : > { %v1647_v19 = vmul.f32 %v3686_v15, %v4588_v35  ;;  %2659 = vpow2.f32 %v1723_v23  ;;  %v1814_v58 = vadd.f32 %v3874_v30, %v1813_v32  ;;  %v1851_v8 = vadd.f32 %v3880_v54, %v1850_v25  ;;  %v3892_v40 = vpop.eup %2635 }
 0x2a7   : > { %v1648_v31 = vmul.f32 %v3688_v28, %v4590_v42  ;;  %v4592_v43 = vmax.f32 %v4591_v14, 0.0  ;;  %v4594_v22 = vmax.f32 %v4593_v59, 0.0  ;;  %2661 = vpow2.f32 %v1725_v37  ;;  %v3900_v55 = vpop.eup %2637 }
 0x2a8   : > { %v1733_v63 = vmul.f32 1.442695, %v1645_v17  ;;  %2663 = vpow2.f32 %v1727_v2  ;;  %v1735_v7 = vmul.f32 1.442695, %v1646_v52  ;;  %v1815_v9 = vadd.f32 %v3888_v56, %v1814_v58  ;;  %v3904_v23 = vpop.eup %2639 }
 0x2a9   : > { %v1649_v33 = vmul.f32 %v3686_v15, %v4592_v43  ;;  %v1650_v34 = vmul.f32 %v3688_v28, %v4594_v22  ;;  %v1852_v10 = vadd.f32 %v3892_v40, %v1851_v8  ;;  %v4596_v16 = vmax.f32 %v4595_v5, 0.0  ;;  %v3912_v37 = vpop.eup %2641  ;;  %v4601_v8 = vld [vmem:[#allocation38_spill] sm:$0xff] }
 0x2aa   : > { %v4598_v32 = vmax.f32 %v4597_v0, 0.0  ;;  %2665 = vpow2.f32 %v1729_v62  ;;  %v1737_v17 = vmul.f32 1.442695, %v1647_v19  ;;  %v1739_v52 = vmul.f32 1.442695, %v1648_v31  ;;  %v3916_v35 = vpop.eup %2643 }
 0x2ab   : > { %v1651_v38 = vmul.f32 %v3686_v15, %v4596_v16  ;;  %2667 = vpow2.f32 %v1731_v11  ;;  %v1816_v2 = vadd.f32 %v3900_v55, %v1815_v9  ;;  %v1853_v49 = vadd.f32 %v3904_v23, %v1852_v10  ;;  %v3924_v62 = vpop.eup %2645  ;;  %v4603_v9 = vld [vmem:[#allocation35_spill] sm:$0xff]  ;;  %v4605_v16 = vld [vmem:[#allocation36_spill] sm:$0xff] }
 0x2ac   : > { %v1652_v25 = vmul.f32 %v3688_v28, %v4598_v32  ;;  %v4600_v42 = vmax.f32 %v4599_v61, 0.0  ;;  %v4602_v14 = vmax.f32 %v4601_v8, 0.0  ;;  %2669 = vpow2.f32 %v1733_v63  ;;  %v3928_v22 = vpop.eup %2647  ;;  %v4608_v61 = vld [vmem:[#allocation41_spill] sm:$0xff] }
 0x2ad   : > { %v1741_v19 = vmul.f32 1.442695, %v1649_v33  ;;  %2671 = vpow2.f32 %v1735_v7  ;;  %v1743_v31 = vmul.f32 1.442695, %v1650_v34  ;;  %v1817_v11 = vadd.f32 %v3912_v37, %v1816_v2  ;;  %v3936_v63 = vpop.eup %2649 }
 0x2ae   : > { %v1653_v58 = vmul.f32 %v3686_v15, %v4600_v42  ;;  %v1654_v43 = vmul.f32 %v3688_v28, %v4602_v14  ;;  %v1854_v59 = vadd.f32 %v3916_v35, %v1853_v49  ;;  %v4604_v10 = vmax.f32 %v4603_v9, 0.0  ;;  %v3940_v49 = vpop.eup %2651  ;;  %v4610_v14 = vld [vmem:[#allocation42_spill] sm:$0xff] }
 0x2af   : > { %v4606_v0 = vmax.f32 %v4605_v16, 0.0  ;;  %2673 = vpow2.f32 %v1737_v17  ;;  %v1745_v33 = vmul.f32 1.442695, %v1651_v38  ;;  %v1747_v34 = vmul.f32 1.442695, %v1652_v25  ;;  %4607 = vst [vmem:[#allocation13_spill] sm:$0xff] %v3940_v49  ;;  %v3948_v17 = vpop.eup %2653 }
 0x2b0   : > { %v1655_v5 = vmul.f32 %v3686_v15, %v4604_v10  ;;  %2675 = vpow2.f32 %v1739_v52  ;;  %v1818_v7 = vadd.f32 %v3924_v62, %v1817_v11  ;;  %v1855_v2 = vadd.f32 %v3928_v22, %v1854_v59  ;;  %v3952_v59 = vpop.eup %2655  ;;  %v4613_v16 = vld [vmem:[#allocation39_spill] sm:$0xff] }
 0x2b1   : > { %v1656_v32 = vmul.f32 %v3688_v28, %v4606_v0  ;;  %v4609_v42 = vmax.f32 %v4608_v61, 0.0  ;;  %v4611_v9 = vmax.f32 %v4610_v14, 0.0  ;;  %2677 = vpow2.f32 %v1741_v19  ;;  %4612 = vst [vmem:[#allocation16_spill] sm:$0xff] %v3952_v59 }
 0x2b2   : > { %v1749_v38 = vmul.f32 1.442695, %v1653_v58  ;;  %2679 = vpow2.f32 %v1743_v31  ;;  %v1751_v25 = vmul.f32 1.442695, %v1654_v43  ;;  %v1819_v52 = vadd.f32 %v3936_v63, %v1818_v7  ;;  %v3960_v19 = vpop.eup %2657 }
 0x2b3   : > { %v1657_v8 = vmul.f32 %v3686_v15, %v4609_v42  ;;  %v1658_v10 = vmul.f32 %v3688_v28, %v4611_v9  ;;  %v1856_v11 = vadd.f32 %v3940_v49, %v1855_v2  ;;  %v4614_v0 = vmax.f32 %v4613_v16, 0.0  ;;  %v4615_v42 = vld [vmem:[#allocation40_spill] sm:$0xff]  ;;  %v3964_v2 = vpop.eup %2659 }
 0x2b4   : > { %v4616_v14 = vmax.f32 %v4615_v42, 0.0  ;;  %2681 = vpow2.f32 %v1745_v33  ;;  %v1753_v58 = vmul.f32 1.442695, %v1655_v5  ;;  %v1755_v43 = vmul.f32 1.442695, %v1656_v32  ;;  %v3966_v49 = vpop.eup %2661 }
 0x2b5   : > { %v1659_v61 = vmul.f32 %v3686_v15, %v4614_v0  ;;  %2683 = vpow2.f32 %v1747_v34  ;;  %v1820_v31 = vadd.f32 %v3948_v17, %v1819_v52  ;;  %v1857_v7 = vadd.f32 %v3952_v59, %v1856_v11  ;;  %v3970_v33 = vpop.eup %2663  ;;  %v4617_v34 = vld [vmem:[#allocation43_spill] sm:$0xff] }
 0x2b6   : > { %v1660_v9 = vmul.f32 %v3688_v28, %v4616_v14  ;;  %2685 = vpow2.f32 %v1749_v38  ;;  %v1757_v16 = vmul.f32 1.442695, %v1657_v8  ;;  %v1759_v0 = vmul.f32 1.442695, %v1658_v10  ;;  %v4619_v14 = vld [vmem:[#allocation44_spill] sm:$0xff] }
 0x2b7   : > { %2687 = vpow2.f32 %v1751_v25  ;;  %v1821_v42 = vadd.f32 %v3960_v19, %v1820_v31  ;;  %v1858_v5 = vadd.f32 %v3964_v2, %v1857_v7  ;;  %v4618_v32 = vmax.f32 %v4617_v34, 0.0  ;;  %v3978_v38 = vpop.eup %2665 }
 0x2b8   : > { %v4620_v11 = vmax.f32 %v4619_v14, 0.0  ;;  %2689 = vpow2.f32 %v1753_v58  ;;  %v1761_v8 = vmul.f32 1.442695, %v1659_v61  ;;  %v1763_v10 = vmul.f32 1.442695, %v1660_v9  ;;  %v3982_v7 = vpop.eup %2667 }
 0x2b9   : > { %v1663_v52 = vmul.f32 %v3686_v15, %v4618_v32  ;;  %2691 = vpow2.f32 %v1755_v43  ;;  %v1822_v25 = vadd.f32 %v3966_v49, %v1821_v42  ;;  %v1859_v31 = vadd.f32 %v3970_v33, %v1858_v5  ;;  %v3985_v15 = vpop.eup %2669 }
 0x2ba   : > { %v1664_v59 = vmul.f32 %v3688_v28, %v4620_v11  ;;  %2693 = vpow2.f32 %v1757_v16  ;;  %v1765_v34 = vmul.f32 1.442695, %v3711_v12  ;;  %v1767_v28 = vmul.f32 1.442695, %v3716_v47  ;;  %v3990_v43 = vpop.eup %2671 }
 0x2bb   : > { %2695 = vpow2.f32 %v1759_v0  ;;  %v1823_v61 = vadd.f32 %v3978_v38, %v1822_v25  ;;  %v1860_v58 = vadd.f32 %v3982_v7, %v1859_v31  ;;  %v1769_v9 = vmul.f32 1.442695, %v1663_v52 }
 0x2bc   : > { %2697 = vpow2.f32 %v1761_v8  ;;  %v3992_v42 = vpop.eup %2673  ;;  %v1771_v5 = vmul.f32 1.442695, %v1664_v59  ;;  %v1773_v47 = vmul.f32 1.442695, %v3721_v26  ;;  %v1775_v14 = vmul.f32 1.442695, %v3726_v60 }
 0x2bd   : > { %2699 = vpow2.f32 %v1763_v10  ;;  %v1824_v16 = vadd.f32 %v3985_v15, %v1823_v61  ;;  %v1861_v12 = vadd.f32 %v3990_v43, %v1860_v58  ;;  %v3996_v32 = vpop.eup %2675  ;;  %v1777_v59 = vmul.f32 1.442695, %v3731_v3 }
 0x2be   : > { %2701 = vpow2.f32 %v1765_v34  ;;  %v3999_v0 = vpop.eup %2677  ;;  %v1779_v25 = vmul.f32 1.442695, %v3736_v39  ;;  %v1781_v60 = vmul.f32 1.442695, %v3741_v4  ;;  %v1783_v61 = vmul.f32 1.442695, %v3746_v18 }
 0x2bf   : > { %2703 = vpow2.f32 %v1767_v28  ;;  %v1825_v52 = vadd.f32 %v3992_v42, %v1824_v16  ;;  %v1862_v11 = vadd.f32 %v3996_v32, %v1861_v12  ;;  %v4004_v8 = vpop.eup %2679  ;;  %v1785_v39 = vmul.f32 1.442695, %v3751_v51 }
 0x2c0   : > { %2705 = vpow2.f32 %v1769_v9  ;;  %v1787_v16 = vmul.f32 1.442695, %v3756_v13  ;;  %v1789_v18 = vmul.f32 1.442695, %v3761_v24  ;;  %v1793_v13 = vmul.f32 1.442695, %v3771_v1 }
 0x2c1   : > { %v4007_v10 = vpop.eup %2681  ;;  %2707 = vpow2.f32 %v1771_v5  ;;  %v1826_v26 = vadd.f32 %v3999_v0, %v1825_v52  ;;  %v1863_v31 = vadd.f32 %v4004_v8, %v1862_v11  ;;  %v1791_v52 = vmul.f32 1.442695, %v3766_v36 }
 0x2c2   : > { %v4012_v34 = vpop.eup %2683  ;;  %2709 = vpow2.f32 %v1773_v47  ;;  %v1797_v36 = vmul.f32 1.442695, %v3779_v20 }
 0x2c3   : > { %v4015_v28 = vpop.eup %2685  ;;  %2711 = vpow2.f32 %v1775_v14  ;;  %v1827_v3 = vadd.f32 %v4007_v10, %v1826_v26  ;;  %v1864_v58 = vadd.f32 %v4012_v34, %v1863_v31  ;;  %v1795_v26 = vmul.f32 1.442695, %v3776_v46 }
 0x2c4   : > { %v4020_v9 = vpop.eup %2687  ;;  %2713 = vpow2.f32 %v1777_v59  ;;  %v1801_v46 = vmul.f32 1.442695, %v3787_v53 }
 0x2c5   : > { %v4023_v5 = vpop.eup %2689  ;;  %2715 = vpow2.f32 %v1779_v25  ;;  %v1828_v4 = vadd.f32 %v4015_v28, %v1827_v3  ;;  %v1865_v12 = vadd.f32 %v4020_v9, %v1864_v58  ;;  %v1799_v3 = vmul.f32 1.442695, %v3782_v29 }
 0x2c6   : > { %v4028_v47 = vpop.eup %2691  ;;  %2717 = vpow2.f32 %v1781_v60  ;;  %v1805_v29 = vmul.f32 1.442695, %v3795_v50 }
 0x2c7   : > { %v4031_v14 = vpop.eup %2693  ;;  %2719 = vpow2.f32 %v1783_v61  ;;  %v1829_v51 = vadd.f32 %v4023_v5, %v1828_v4  ;;  %v1866_v11 = vadd.f32 %v4028_v47, %v1865_v12  ;;  %v1803_v4 = vmul.f32 1.442695, %v3792_v44 }
 0x2c8   : > { %v4036_v59 = vpop.eup %2695  ;;  %2721 = vpow2.f32 %v1785_v39  ;;  %v1809_v44 = vmul.f32 1.442695, %v3801_v21 }
 0x2c9   : > { %v4039_v25 = vpop.eup %2697  ;;  %2723 = vpow2.f32 %v1787_v16  ;;  %v1830_v24 = vadd.f32 %v4031_v14, %v1829_v51  ;;  %v1867_v31 = vadd.f32 %v4036_v59, %v1866_v11  ;;  %v1807_v51 = vmul.f32 1.442695, %v3798_v48 }
 0x2ca   : > { %v4044_v60 = vpop.eup %2699  ;;  %2725 = vpow2.f32 %v1789_v18 }
 0x2cb   : > { %v4047_v61 = vpop.eup %2701  ;;  %2727 = vpow2.f32 %v1791_v52  ;;  %v1831_v1 = vadd.f32 %v4039_v25, %v1830_v24  ;;  %v1868_v58 = vadd.f32 %v4044_v60, %v1867_v31  ;;  %v1811_v24 = vmul.f32 1.442695, %v3804_v27 }
 0x2cc   : > { %v4052_v39 = vpop.eup %2703  ;;  %2729 = vpow2.f32 %v1793_v13 }
 0x2cd   : > { %v4055_v16 = vpop.eup %2705  ;;  %2731 = vpow2.f32 %v1795_v26  ;;  %v1832_v20 = vadd.f32 %v4047_v61, %v1831_v1  ;;  %v1869_v12 = vadd.f32 %v4052_v39, %v1868_v58 }
 0x2ce   : > { %v4060_v18 = vpop.eup %2707  ;;  %2733 = vpow2.f32 %v1797_v36 }
 0x2cf   : > { %v4063_v52 = vpop.eup %2709  ;;  %2735 = vpow2.f32 %v1799_v3  ;;  %v1833_v53 = vadd.f32 %v4055_v16, %v1832_v20  ;;  %v1870_v11 = vadd.f32 %v4060_v18, %v1869_v12 }
 0x2d0   : > { %v4068_v13 = vpop.eup %2711  ;;  %2737 = vpow2.f32 %v1801_v46 }
 0x2d1   : > { %4621 = vst [vmem:[#allocation17_spill] sm:$0xff] %v4068_v13  ;;  %v4071_v26 = vpop.eup %2713  ;;  %2739 = vpow2.f32 %v1803_v4  ;;  %v1834_v50 = vadd.f32 %v4063_v52, %v1833_v53  ;;  %v1871_v31 = vadd.f32 %v4068_v13, %v1870_v11 }
 0x2d2   : > { %4622 = vst [vmem:[#allocation14_spill] sm:$0xff] %v4071_v26  ;;  %v4076_v36 = vpop.eup %2715  ;;  %2741 = vpow2.f32 %v1805_v29 }
 0x2d3   : > { %4623 = vst [vmem:[#allocation15_spill] sm:$0xff] %v4076_v36  ;;  %v4078_v48 = vpop.eup %2717  ;;  %2743 = vpow2.f32 %v1807_v51  ;;  %v1835_v3 = vadd.f32 %v4071_v26, %v1834_v50  ;;  %v1872_v1 = vadd.f32 %v4076_v36, %v1871_v31 }
 0x2d4   : > { %4624 = vst [vmem:[#allocation18_spill] sm:$0xff] %v4078_v48  ;;  %v4082_v21 = vpop.eup %2719  ;;  %2745 = vpow2.f32 %v1809_v44 }
 0x2d5   : > { %4625 = vst [vmem:[#allocation19_spill] sm:$0xff] %v4082_v21  ;;  %v4084_v58 = vpop.eup %2721  ;;  %2747 = vpow2.f32 %v1811_v24  ;;  %v1836_v27 = vadd.f32 %v4078_v48, %v1835_v3  ;;  %v1873_v46 = vadd.f32 %v4082_v21, %v1872_v1 }
 0x2d6   : > { %4626 = vst [vmem:[#allocation20_spill] sm:$0xff] %v4084_v58  ;;  %v4088_v4 = vpop.eup %2723 }
 0x2d7   : > { %4627 = vst [vmem:[#allocation21_spill] sm:$0xff] %v4088_v4  ;;  %v4090_v20 = vpop.eup %2725  ;;  %v1837_v12 = vadd.f32 %v4084_v58, %v1836_v27  ;;  %v1874_v29 = vadd.f32 %v4088_v4, %v1873_v46 }
 0x2d8   : > { %4628 = vst [vmem:[#allocation22_spill] sm:$0xff] %v4090_v20  ;;  %v4094_v51 = vpop.eup %2727 }
 0x2d9   : > { %4629 = vst [vmem:[#allocation23_spill] sm:$0xff] %v4094_v51  ;;  %v4096_v53 = vpop.eup %2729  ;;  %v1838_v11 = vadd.f32 %v4090_v20, %v1837_v12  ;;  %v1875_v44 = vadd.f32 %v4094_v51, %v1874_v29 }
 0x2da   : > { %4630 = vst [vmem:[#allocation24_spill] sm:$0xff] %v4096_v53  ;;  %v4100_v24 = vpop.eup %2731 }
 0x2db   : > { %4631 = vst [vmem:[#allocation25_spill] sm:$0xff] %v4100_v24  ;;  %v4102_v50 = vpop.eup %2733  ;;  %v1839_v31 = vadd.f32 %v4096_v53, %v1838_v11  ;;  %v1876_v3 = vadd.f32 %v4100_v24, %v1875_v44 }
 0x2dc   : > { %4632 = vst [vmem:[#allocation26_spill] sm:$0xff] %v4102_v50  ;;  %v4106_v1 = vpop.eup %2735 }
 0x2dd   : > { %4633 = vst [vmem:[#allocation29_spill] sm:$0xff] %v4106_v1  ;;  %v4108_v27 = vpop.eup %2737  ;;  %v1840_v46 = vadd.f32 %v4102_v50, %v1839_v31  ;;  %v1877_v4 = vadd.f32 %v4106_v1, %v1876_v3 }
 0x2de   : > { %4634 = vst [vmem:[#allocation30_spill] sm:$0xff] %v4108_v27  ;;  %v4112_v58 = vpop.eup %2739 }
 0x2df   : > { %4635 = vst [vmem:[#allocation27_spill] sm:$0xff] %v4112_v58  ;;  %v4114_v12 = vpop.eup %2741  ;;  %v1841_v29 = vadd.f32 %v4108_v27, %v1840_v46  ;;  %v1878_v51 = vadd.f32 %v4112_v58, %v1877_v4 }
 0x2e0   : > { %v4118_v20 = vpop.eup %2743 }
 0x2e1   : > { %4636 = vst [vmem:[#allocation28_spill] sm:$0xff] %v4118_v20  ;;  %v4120_v11 = vpop.eup %2745  ;;  %v1842_v44 = vadd.f32 %v4114_v12, %v1841_v29  ;;  %v1879_v24 = vadd.f32 %v4118_v20, %v1878_v51 }
 0x2e2   : > { %v4124_v53 = vpop.eup %2747 }
 0x2e3   : > { %v1843_v31 = vadd.f32 %v4120_v11, %v1842_v44  ;;  %v1880_v3 = vadd.f32 %v4124_v53, %v1879_v24 }
 0x2e5   : > { %v1844_v1 = vrot.slane %v1843_v31, 4  ;;  %v1881_v50 = vrot.slane %v1880_v3, 4 }
 0x2e7   : > { %v1845_v21 = vadd.f32 %v1844_v1, %v1843_v31  ;;  %v1882_v46 = vadd.f32 %v1881_v50, %v1880_v3 }
 0x2e9   : > { %v1846_v27 = vrot.slane %v1845_v21, 2  ;;  %v1883_v4 = vrot.slane %v1882_v46, 2 }
 0x2eb   : > { %v1847_v58 = vadd.f32 %v1846_v27, %v1845_v21  ;;  %v1884_v48 = vadd.f32 %v1883_v4, %v1882_v46  ;;  %v4637_v46 = vld [vmem:[#allocation13_spill] sm:$0xff] }
 0x2ed   : > { %v1848_v36 = vrot.slane %v1847_v58, 1  ;;  %v1885_v26 = vrot.slane %v1884_v48, 1 }
 0x2ef   : > { %v1849_v13 = vadd.f32 %v1848_v36, %v1847_v58  ;;  %v1886_v29 = vadd.f32 %v1885_v26, %v1884_v48 }
 0x2f1   : > { %2749 = vrcp.f32 %v1849_v13 }
 0x2f2   : > { %2751 = vrcp.f32 %v1886_v29 }
 0x2fe   : > { %v4128_v51 = vpop.eup %2749 }
 0x2ff   : > { %v4130_v20 = vpop.eup %2751  ;;  %v1891_v24 = vmul.f32 %v4128_v51, %v3855_v57  ;;  %v1889_v50 = vmul.f32 %v4128_v51, %v3845_v6  ;;  %v1893_v21 = vmul.f32 %v4128_v51, %v3874_v30  ;;  %v1895_v1 = vmul.f32 %v4128_v51, %v3888_v56 }
 0x300   : > { %v1892_v13 = vmul.f32 %v4130_v20, %v3860_v41  ;;  %v1890_v26 = vmul.f32 %v4130_v20, %v3850_v45  ;;  %v1894_v36 = vmul.f32 %v4130_v20, %v3880_v54  ;;  %v1896_v57 = vmul.f32 %v4130_v20, %v3892_v40 }
 0x301   : > { %v1897_v6 = vmul.f32 %v4128_v51, %v3900_v55  ;;  %v1898_v30 = vmul.f32 %v4130_v20, %v3904_v23  ;;  %v1899_v56 = vmul.f32 %v4128_v51, %v3912_v37  ;;  %v1900_v41 = vmul.f32 %v4130_v20, %v3916_v35 }
 0x302   : > { %v1954_v48 = vmax.f32 %v1891_v24, %v1892_v13  ;;  %v1953_v45 = vmax.f32 %v1889_v50, %v1890_v26  ;;  %v1955_v58 = vmax.f32 %v1893_v21, %v1894_v36  ;;  %v1956_v27 = vmax.f32 %v1895_v1, %v1896_v57  ;;  %v4638_v24 = vld [vmem:[#allocation16_spill] sm:$0xff] }
 0x303   : > { %v1957_v54 = vmax.f32 %v1897_v6, %v1898_v30  ;;  %v1958_v44 = vmax.f32 %v1899_v56, %v1900_v41  ;;  %v1901_v40 = vmul.f32 %v4128_v51, %v3924_v62  ;;  %v1902_v55 = vmul.f32 %v4130_v20, %v3928_v22 }
 0x304   : > { %v2018_v31 = vmax.f32 %v1954_v48, 0.0  ;;  %v2017_v23 = vmax.f32 %v1953_v45, 0.0  ;;  %v1903_v37 = vmul.f32 %v4128_v51, %v3936_v63  ;;  %v2019_v35 = vmax.f32 %v1955_v58, 0.0 }
 0x305   : > { %v1959_v3 = vmax.f32 %v1901_v40, %v1902_v55  ;;  %v1904_v4 = vmul.f32 %v4130_v20, %v4637_v46  ;;  %v1905_v29 = vmul.f32 %v4128_v51, %v3948_v17  ;;  %v1906_v62 = vmul.f32 %v4130_v20, %v4638_v24 }
 0x306   : > { %2118 = vmax.xlane.f32.xlu0 %v2018_v31  ;;  %2116 = vmax.xlane.f32.xlu1 %v2017_v23  ;;  %v2020_v50 = vmax.f32 %v1956_v27, 0.0  ;;  %v1907_v22 = vmul.f32 %v4128_v51, %v3960_v19  ;;  %v1908_v21 = vmul.f32 %v4130_v20, %v3964_v2  ;;  %v1909_v63 = vmul.f32 %v4128_v51, %v3966_v49 }
 0x307   : > { %v1960_v1 = vmax.f32 %v1903_v37, %v1904_v4  ;;  %v1961_v13 = vmax.f32 %v1905_v29, %v1906_v62  ;;  %v1910_v26 = vmul.f32 %v4130_v20, %v3970_v33  ;;  %v1911_v17 = vmul.f32 %v4128_v51, %v3978_v38  ;;  %v4640_v4 = vld [vmem:[#allocation14_spill] sm:$0xff]  ;;  %v4641_v29 = vld [vmem:[#allocation15_spill] sm:$0xff] }
 0x308   : > { %v1962_v36 = vmax.f32 %v1907_v22, %v1908_v21  ;;  %v1912_v57 = vmul.f32 %v4130_v20, %v3982_v7  ;;  %v4182_v19 = vmul.f32 %v4128_v51, %v3985_v15  ;;  %v4186_v2 = vmul.f32 %v4130_v20, %v3990_v43  ;;  %v4642_v62 = vld [vmem:[#allocation18_spill] sm:$0xff] }
 0x309   : > { %v1963_v49 = vmax.f32 %v1909_v63, %v1910_v26  ;;  %v4190_v33 = vmul.f32 %v4128_v51, %v3992_v42  ;;  %v2021_v38 = vmax.f32 %v1957_v54, 0.0  ;;  %v4196_v15 = vmul.f32 %v4130_v20, %v3996_v32  ;;  %v4644_v63 = vld [vmem:[#allocation20_spill] sm:$0xff] }
 0x30a   : > { %2120 = vmax.xlane.f32.xlu0 %v2019_v35  ;;  %2122 = vmax.xlane.f32.xlu1 %v2020_v50  ;;  %v1964_v6 = vmax.f32 %v1911_v17, %v1912_v57  ;;  %v1965_v7 = vmax.f32 %v4182_v19, %v4186_v2  ;;  %v2022_v30 = vmax.f32 %v1958_v44, 0.0  ;;  %v4200_v43 = vmul.f32 %v4128_v51, %v3999_v0  ;;  %v4639_v35 = vld [vmem:[#allocation17_spill] sm:$0xff]  ;;  %v4643_v50 = vld [vmem:[#allocation19_spill] sm:$0xff]  ;;  %v4646_v57 = vld [vmem:[#allocation22_spill] sm:$0xff] }
 0x30b   : > { %v4204_v56 = vmul.f32 %v4130_v20, %v4004_v8  ;;  %v4208_v42 = vmul.f32 %v4128_v51, %v4007_v10  ;;  %v1966_v41 = vmax.f32 %v4190_v33, %v4196_v15  ;;  %v4214_v32 = vmul.f32 %v4130_v20, %v4012_v34  ;;  %v4647_v2 = vld [vmem:[#allocation23_spill] sm:$0xff]  ;;  %v4648_v15 = vld [vmem:[#allocation24_spill] sm:$0xff] }
 0x30c   : > { %v4220_v8 = vmul.f32 %v4128_v51, %v4015_v28  ;;  %v4224_v10 = vmul.f32 %v4130_v20, %v4020_v9  ;;  %v2023_v48 = vmax.f32 %v1959_v3, 0.0  ;;  %v4230_v34 = vmul.f32 %v4128_v51, %v4023_v5 }
 0x30d   : > { %v1967_v0 = vmax.f32 %v4200_v43, %v4204_v56  ;;  %v1968_v45 = vmax.f32 %v4208_v42, %v4214_v32  ;;  %v4234_v58 = vmul.f32 %v4130_v20, %v4028_v47  ;;  %v2024_v27 = vmax.f32 %v1960_v1, 0.0 }
 0x30e   : > { %2124 = vmax.xlane.f32.xlu0 %v2021_v38  ;;  %2126 = vmax.xlane.f32.xlu1 %v2022_v30  ;;  %v1969_v28 = vmax.f32 %v4220_v8, %v4224_v10  ;;  %v4240_v9 = vmul.f32 %v4128_v51, %v4031_v14  ;;  %v4244_v54 = vmul.f32 %v4130_v20, %v4036_v59  ;;  %v2025_v55 = vmax.f32 %v1961_v13, 0.0  ;;  %v4645_v13 = vld [vmem:[#allocation21_spill] sm:$0xff]  ;;  %v4650_v8 = vld [vmem:[#allocation26_spill] sm:$0xff] }
 0x30f   : > { %v1970_v5 = vmax.f32 %v4230_v34, %v4234_v58  ;;  %v4250_v44 = vmul.f32 %v4128_v51, %v4039_v25  ;;  %v1928_v47 = vmul.f32 %v4130_v20, %v4044_v60  ;;  %v1929_v40 = vmul.f32 %v4128_v51, %v4047_v61  ;;  %v4651_v10 = vld [vmem:[#allocation29_spill] sm:$0xff] }
 0x310   : > { %v1971_v14 = vmax.f32 %v4240_v9, %v4244_v54  ;;  %v1930_v59 = vmul.f32 %v4130_v20, %v4052_v39  ;;  %v1931_v25 = vmul.f32 %v4128_v51, %v4055_v16  ;;  %v1932_v60 = vmul.f32 %v4130_v20, %v4060_v18  ;;  %v4653_v54 = vld [vmem:[#allocation27_spill] sm:$0xff] }
 0x311   : > { %v1972_v31 = vmax.f32 %v4250_v44, %v1928_v47  ;;  %v2026_v23 = vmax.f32 %v1962_v36, 0.0  ;;  %v1933_v37 = vmul.f32 %v4128_v51, %v4063_v52  ;;  %v1934_v61 = vmul.f32 %v4130_v20, %v4639_v35 }
 0x312   : > { %2128 = vmax.xlane.f32.xlu0 %v2023_v48  ;;  %2130 = vmax.xlane.f32.xlu1 %v2024_v27  ;;  %v1973_v3 = vmax.f32 %v1929_v40, %v1930_v59  ;;  %v1974_v46 = vmax.f32 %v1931_v25, %v1932_v60  ;;  %v1935_v39 = vmul.f32 %v4128_v51, %v4640_v4  ;;  %v2027_v52 = vmax.f32 %v1963_v49, 0.0  ;;  %v4649_v49 = vld [vmem:[#allocation25_spill] sm:$0xff]  ;;  %v4652_v27 = vld [vmem:[#allocation30_spill] sm:$0xff] }
 0x313   : > { %v1936_v24 = vmul.f32 %v4130_v20, %v4641_v29  ;;  %v1975_v16 = vmax.f32 %v1933_v37, %v1934_v61  ;;  %v1937_v18 = vmul.f32 %v4128_v51, %v4642_v62  ;;  %v1938_v22 = vmul.f32 %v4130_v20, %v4643_v50 }
 0x314   : > { %v1939_v1 = vmul.f32 %v4128_v51, %v4644_v63  ;;  %v1940_v26 = vmul.f32 %v4130_v20, %v4645_v13  ;;  %v2028_v17 = vmax.f32 %v1964_v6, 0.0  ;;  %v1941_v19 = vmul.f32 %v4128_v51, %v4646_v57 }
 0x315   : > { %v1976_v21 = vmax.f32 %v1935_v39, %v1936_v24  ;;  %v1977_v36 = vmax.f32 %v1937_v18, %v1938_v22  ;;  %v1942_v33 = vmul.f32 %v4130_v20, %v4647_v2  ;;  %v1943_v30 = vmul.f32 %v4128_v51, %v4648_v15 }
 0x316   : > { %2132 = vmax.xlane.f32.xlu0 %v2025_v55  ;;  %2134 = vmax.xlane.f32.xlu1 %v2026_v23  ;;  %v1978_v38 = vmax.f32 %v1939_v1, %v1940_v26  ;;  %v1944_v42 = vmul.f32 %v4130_v20, %v4649_v49  ;;  %v1945_v6 = vmul.f32 %v4128_v51, %v4650_v8  ;;  %v2029_v34 = vmax.f32 %v1965_v7, 0.0  ;;  %v4654_v55 = vld [vmem:[#allocation28_spill] sm:$0xff] }
 0x317   : > { %v1979_v32 = vmax.f32 %v1941_v19, %v1942_v33  ;;  %v1946_v48 = vmul.f32 %v4130_v20, %v4651_v10  ;;  %v1947_v9 = vmul.f32 %v4128_v51, %v4652_v27  ;;  %v1948_v44 = vmul.f32 %v4130_v20, %v4653_v54 }
 0x318   : > { %v1980_v58 = vmax.f32 %v1943_v30, %v1944_v42  ;;  %v2030_v47 = vmax.f32 %v1966_v41, 0.0  ;;  %v1949_v59 = vmul.f32 %v4128_v51, %v4114_v12  ;;  %v1950_v25 = vmul.f32 %v4130_v20, %v4654_v55 }
 0x319   : > { %v1981_v40 = vmax.f32 %v1945_v6, %v1946_v48  ;;  %v1982_v60 = vmax.f32 %v1947_v9, %v1948_v44  ;;  %v1951_v23 = vmul.f32 %v4128_v51, %v4120_v11  ;;  %v1952_v7 = vmul.f32 %v4130_v20, %v4124_v53 }
 0x31a   : > { %2136 = vmax.xlane.f32.xlu0 %v2027_v52  ;;  %2138 = vmax.xlane.f32.xlu1 %v2028_v17  ;;  %v1983_v37 = vmax.f32 %v1949_v59, %v1950_v25  ;;  %v2031_v41 = vmax.f32 %v1967_v0, 0.0  ;;  %v2032_v61 = vmax.f32 %v1968_v45, 0.0  ;;  %v2033_v12 = vmax.f32 %v1969_v28, 0.0 }
 0x31b   : > { %v1984_v35 = vmax.f32 %v1951_v23, %v1952_v7  ;;  %v2034_v4 = vmax.f32 %v1970_v5, 0.0  ;;  %v2035_v39 = vmax.f32 %v1971_v14, 0.0  ;;  %v2036_v11 = vmax.f32 %v1972_v31, 0.0 }
 0x31c   : > { %v2037_v20 = vmax.f32 %v1973_v3, 0.0  ;;  %v2038_v53 = vmax.f32 %v1974_v46, 0.0  ;;  %v2039_v51 = vmax.f32 %v1975_v16, 0.0  ;;  %v2040_v29 = vmax.f32 %v1976_v21, 0.0 }
 0x31d   : > { %v2041_v43 = vmax.f32 %v1977_v36, 0.0  ;;  %v2042_v56 = vmax.f32 %v1978_v38, 0.0  ;;  %v2043_v0 = vmax.f32 %v1979_v32, 0.0  ;;  %v2044_v45 = vmax.f32 %v1980_v58, 0.0 }
 0x31e   : > { %2140 = vmax.xlane.f32.xlu0 %v2029_v34  ;;  %2142 = vmax.xlane.f32.xlu1 %v2030_v47  ;;  %v2045_v28 = vmax.f32 %v1981_v40, 0.0  ;;  %v2046_v5 = vmax.f32 %v1982_v60, 0.0  ;;  %v2047_v14 = vmax.f32 %v1983_v37, 0.0  ;;  %v2048_v31 = vmax.f32 %v1984_v35, 0.0 }
 0x322   : > { %2144 = vmax.xlane.f32.xlu0 %v2031_v41  ;;  %2146 = vmax.xlane.f32.xlu1 %v2032_v61 }
 0x326   : > { %2148 = vmax.xlane.f32.xlu0 %v2033_v12  ;;  %2150 = vmax.xlane.f32.xlu1 %v2034_v4 }
 0x32a   : > { %2152 = vmax.xlane.f32.xlu0 %v2035_v39  ;;  %2154 = vmax.xlane.f32.xlu1 %v2036_v11 }
 0x32e   : > { %2156 = vmax.xlane.f32.xlu0 %v2037_v20  ;;  %2158 = vmax.xlane.f32.xlu1 %v2038_v53 }
 0x332   : > { %2160 = vmax.xlane.f32.xlu0 %v2039_v51  ;;  %2162 = vmax.xlane.f32.xlu1 %v2040_v29 }
 0x336   : > { %2164 = vmax.xlane.f32.xlu0 %v2041_v43  ;;  %2166 = vmax.xlane.f32.xlu1 %v2042_v56 }
 0x33a   : > { %2168 = vmax.xlane.f32.xlu0 %v2043_v0  ;;  %2170 = vmax.xlane.f32.xlu1 %v2044_v45 }
 0x33e   : > { %2172 = vmax.xlane.f32.xlu0 %v2045_v28  ;;  %2174 = vmax.xlane.f32.xlu1 %v2046_v5 }
 0x342   : > { %2176 = vmax.xlane.f32.xlu0 %v2047_v14  ;;  %2178 = vmax.xlane.f32.xlu1 %v2048_v31 }
 0x38f   : > { %v2119_v3 = vpop.xlane.xlu0 %2118  ;;  %v2117_v46 = vpop.xlane.xlu1 %2116 }
 0x390   : > { %v2182_v24 = vsel %vm678_vm2, %v2119_v3, 0.0  ;;  %v2181_v16 = vsel %vm678_vm2, %v2117_v46, 0.0 }
 0x391   : > { %v2183_v62 = vadd.f32 %v2182_v24, %v2181_v16 }
 0x393   : > { %v2121_v18 = vpop.xlane.xlu0 %2120  ;;  %v2123_v50 = vpop.xlane.xlu1 %2122 }
 0x394   : > { %v2184_v22 = vsel %vm678_vm2, %v2121_v18, 0.0  ;;  %v2186_v21 = vsel %vm678_vm2, %v2123_v50, 0.0 }
 0x395   : > { %v2185_v52 = vadd.f32 %v2184_v22, %v2183_v62 }
 0x397   : > { %v2187_v63 = vadd.f32 %v2186_v21, %v2185_v52  ;;  %v2125_v1 = vpop.xlane.xlu0 %2124  ;;  %v2127_v13 = vpop.xlane.xlu1 %2126 }
 0x398   : > { %v2188_v26 = vsel %vm678_vm2, %v2125_v1, 0.0  ;;  %v2190_v36 = vsel %vm678_vm2, %v2127_v13, 0.0 }
 0x399   : > { %v2189_v17 = vadd.f32 %v2188_v26, %v2187_v63 }
 0x39b   : > { %v2191_v57 = vadd.f32 %v2190_v36, %v2189_v17  ;;  %v2129_v19 = vpop.xlane.xlu0 %2128  ;;  %v2131_v2 = vpop.xlane.xlu1 %2130 }
 0x39c   : > { %v2192_v33 = vsel %vm678_vm2, %v2129_v19, 0.0  ;;  %v2194_v15 = vsel %vm678_vm2, %v2131_v2, 0.0 }
 0x39d   : > { %v2193_v38 = vadd.f32 %v2192_v33, %v2191_v57 }
 0x39f   : > { %v2195_v30 = vadd.f32 %v2194_v15, %v2193_v38  ;;  %v2133_v49 = vpop.xlane.xlu0 %2132  ;;  %v2135_v42 = vpop.xlane.xlu1 %2134 }
 0x3a0   : > { %v2196_v32 = vsel %vm678_vm2, %v2133_v49, 0.0  ;;  %v2198_v6 = vsel %vm678_vm2, %v2135_v42, 0.0 }
 0x3a1   : > { %v2197_v8 = vadd.f32 %v2196_v32, %v2195_v30 }
 0x3a3   : > { %v2199_v10 = vadd.f32 %v2198_v6, %v2197_v8  ;;  %v2137_v48 = vpop.xlane.xlu0 %2136  ;;  %v2139_v34 = vpop.xlane.xlu1 %2138 }
 0x3a4   : > { %v2200_v58 = vsel %vm678_vm2, %v2137_v48, 0.0  ;;  %v2202_v9 = vsel %vm678_vm2, %v2139_v34, 0.0 }
 0x3a5   : > { %v2201_v27 = vadd.f32 %v2200_v58, %v2199_v10 }
 0x3a7   : > { %v2203_v54 = vadd.f32 %v2202_v9, %v2201_v27  ;;  %v2141_v44 = vpop.xlane.xlu0 %2140  ;;  %v2143_v47 = vpop.xlane.xlu1 %2142 }
 0x3a8   : > { %v2204_v40 = vsel %vm678_vm2, %v2141_v44, 0.0  ;;  %v2206_v55 = vsel %vm678_vm2, %v2143_v47, 0.0 }
 0x3a9   : > { %v2205_v59 = vadd.f32 %v2204_v40, %v2203_v54 }
 0x3ab   : > { %v2207_v25 = vadd.f32 %v2206_v55, %v2205_v59  ;;  %v2145_v60 = vpop.xlane.xlu0 %2144  ;;  %v2147_v23 = vpop.xlane.xlu1 %2146 }
 0x3ac   : > { %v2208_v7 = vsel %vm678_vm2, %v2145_v60, 0.0  ;;  %v2210_v35 = vsel %vm678_vm2, %v2147_v23, 0.0 }
 0x3ad   : > { %v2209_v37 = vadd.f32 %v2208_v7, %v2207_v25 }
 0x3af   : > { %v2211_v41 = vadd.f32 %v2210_v35, %v2209_v37  ;;  %v2149_v61 = vpop.xlane.xlu0 %2148  ;;  %v2151_v12 = vpop.xlane.xlu1 %2150 }
 0x3b0   : > { %v2212_v4 = vsel %vm678_vm2, %v2149_v61, 0.0  ;;  %v2214_v11 = vsel %vm678_vm2, %v2151_v12, 0.0 }
 0x3b1   : > { %v2213_v39 = vadd.f32 %v2212_v4, %v2211_v41 }
 0x3b3   : > { %v2215_v20 = vadd.f32 %v2214_v11, %v2213_v39  ;;  %v2153_v53 = vpop.xlane.xlu0 %2152  ;;  %v2155_v51 = vpop.xlane.xlu1 %2154 }
 0x3b4   : > { %v2216_v29 = vsel %vm678_vm2, %v2153_v53, 0.0  ;;  %v2218_v56 = vsel %vm678_vm2, %v2155_v51, 0.0 }
 0x3b5   : > { %v2217_v43 = vadd.f32 %v2216_v29, %v2215_v20 }
 0x3b7   : > { %v2219_v0 = vadd.f32 %v2218_v56, %v2217_v43  ;;  %v2157_v45 = vpop.xlane.xlu0 %2156  ;;  %v2159_v28 = vpop.xlane.xlu1 %2158 }
 0x3b8   : > { %v2220_v5 = vsel %vm678_vm2, %v2157_v45, 0.0  ;;  %v2222_v31 = vsel %vm678_vm2, %v2159_v28, 0.0 }
 0x3b9   : > { %v2221_v14 = vadd.f32 %v2220_v5, %v2219_v0 }
 0x3bb   : > { %v2223_v3 = vadd.f32 %v2222_v31, %v2221_v14  ;;  %v2161_v46 = vpop.xlane.xlu0 %2160  ;;  %v2163_v24 = vpop.xlane.xlu1 %2162 }
 0x3bc   : > { %v2224_v16 = vsel %vm678_vm2, %v2161_v46, 0.0  ;;  %v2226_v18 = vsel %vm678_vm2, %v2163_v24, 0.0 }
 0x3bd   : > { %v2225_v62 = vadd.f32 %v2224_v16, %v2223_v3 }
 0x3bf   : > { %v2227_v50 = vadd.f32 %v2226_v18, %v2225_v62  ;;  %v2165_v22 = vpop.xlane.xlu0 %2164  ;;  %v2167_v52 = vpop.xlane.xlu1 %2166 }
 0x3c0   : > { %v2228_v21 = vsel %vm678_vm2, %v2165_v22, 0.0  ;;  %v2230_v1 = vsel %vm678_vm2, %v2167_v52, 0.0 }
 0x3c1   : > { %v2229_v63 = vadd.f32 %v2228_v21, %v2227_v50 }
 0x3c3   : > { %v2231_v13 = vadd.f32 %v2230_v1, %v2229_v63  ;;  %v2169_v26 = vpop.xlane.xlu0 %2168  ;;  %v2171_v17 = vpop.xlane.xlu1 %2170 }
 0x3c4   : > { %v2232_v36 = vsel %vm678_vm2, %v2169_v26, 0.0  ;;  %v2234_v19 = vsel %vm678_vm2, %v2171_v17, 0.0 }
 0x3c5   : > { %v2233_v57 = vadd.f32 %v2232_v36, %v2231_v13 }
 0x3c7   : > { %v2235_v2 = vadd.f32 %v2234_v19, %v2233_v57  ;;  %v2173_v33 = vpop.xlane.xlu0 %2172  ;;  %v2175_v38 = vpop.xlane.xlu1 %2174 }
 0x3c8   : > { %v2236_v15 = vsel %vm678_vm2, %v2173_v33, 0.0  ;;  %v2238_v49 = vsel %vm678_vm2, %v2175_v38, 0.0 }
 0x3c9   : > { %v2237_v30 = vadd.f32 %v2236_v15, %v2235_v2 }
 0x3cb   : > { %v2239_v42 = vadd.f32 %v2238_v49, %v2237_v30  ;;  %v2177_v32 = vpop.xlane.xlu0 %2176  ;;  %v2179_v8 = vpop.xlane.xlu1 %2178 }
 0x3cc   : > { %v2240_v6 = vsel %vm678_vm2, %v2177_v32, 0.0  ;;  %v2242_v48 = vsel %vm678_vm2, %v2179_v8, 0.0 }
 0x3cd   : > { %v2241_v10 = vadd.f32 %v2240_v6, %v2239_v42 }
 0x3cf   : > { %v2243_v34 = vadd.f32 %v2242_v48, %v2241_v10 }
 0x3d1   : > { %2244 = vadd.xlane.f32.xlu0 %v2243_v34 }
 0x45a   : > { %v2245_v58 = vpop.xlane.xlu0 %2244 }
 0x45b   : > { %v2246_v27 = vrot.slane %v2245_v58, 4 }
 0x45d   : > { %v2247_v9 = vadd.f32 %v2246_v27, %v2245_v58 }
 0x45f   : > { %v2248_v54 = vrot.slane %v2247_v9, 2 }
 0x461   : > { %v2249_v44 = vadd.f32 %v2248_v54, %v2247_v9 }
 0x463   : > { %v2250_v47 = vrot.slane %v2249_v44, 1 }
 0x465   : > { %v2251_v40 = vadd.f32 %v2250_v47, %v2249_v44 }
 0x467   : > { %2541 = vpush %v2251_v40 }
 0x498   : > { %s2542_s20 = spop %2541 }
 0x499   : > { %s2255_s28 = smul.f32 0.00390625, %s2542_s20 }
 0x49b   : > { %v2256_v59 = vstv %s2255_s28 }
 0x49c   : > { %2257 = vst [vmem:[%s212_s21] sm:$0x1] %v2256_v59 }
 0x49d   : > { %2822 = shalt.err (!%p2819_p6)
}
 0x49e   : > { %s2823_s26 = scalar_lea.hbm %s4345_s7, 16  ;;  %s2827_s15 = scalar_lea.hbm %s4389_s2, 32 }
 0x49f   : > { %p2824_p7 = scmp.ne.s32.totalorder %s4345_s7, %s2823_s26  ;;  %p2828_p4 = scmp.lt.s32.totalorder %s4345_s7, %s4389_s2 }
 0x4a0   : > { %p2829_p10 = scmp.lt.s32.totalorder %s2827_s15, %s2823_s26 }
 0x4a1   : > { %p2825_p1 = pnand %p2824_p7, %p2967_p9 }
 0x4a2   : > { %p2830_p8 = por %p2829_p10, %p2828_p4 }
 0x4a3   : > { %p2826_p2 = pneg %p2825_p1 }
 0x4a5   : > { %p2831_p0 = pnand %p2830_p8, %p2826_p2 }
 0x4a7   : > { %2834 = shalt.err (!%p2831_p0)
}
 0x4a8   : > { %2547 = dma.vmem_to_hbm [thread:$0]  (%p2967_p9), %s2272_s18, 16, %s4345_s7, %s2259_s8  }
 0x4a9 PF: > { %s2283_s21 = sand.u32 1, %s2873_s9   ;;  %p4655_p3 = scmp.ge.s32.totalorder %s2893_s14, 2 }
 0x4aa   : > { %s2284_s19 = scalar_lea.sflag [#allocation6], %s2283_s21 }
 0x4ab   : > { %p2557_p13 = pnand %p4655_p3, %p2974_p11 }
 0x4ad   : > { %p2558_p5 = pneg %p2557_p13 }
 0x4af   : > { %2868 = dma.done.wait (%p2558_p5), %s2284_s19, 16  }
 0x4b0   : > { %2870 = vsyncadd (%p2558_p5), %s2284_s19, 4294967280  ;;  %s21_s14 = sadd.s32 1, %s2893_s14   ;;  %s4656_s9 = smov %s2877_s10 }
 0x4b1   : > { %p18_p12 = scmp.ge.s32.totalorder %s21_s14, 4   ;;  %s4657_s10 = smov %s2881_s11 }
 0x4b2   : > { %s4658_s11 = smov %s2972_s23  ;;  %s4659_s12 = smov %s2889_s13 }
 0x4b3   : > { %s4660_s13 = smov %s4662_s17  ;;  %20 = sbr.rel (!%p18_p12) target bundleno = 8 (0x8), region = 94 }
 0x4b8   :  { %2288 = vsyncpa [#allocation5], 1 }
 0x4b9   :  { %2290 = vsyncpa [#allocation5 + $0x1], 1 }
 0x4ba   :  { %2291 = vsyncpa [#allocation8], 1 }
 0x4bb   :  { %2293 = vsyncpa [#allocation8 + $0x1], 1 }
 0x4bc   :  { %2294 = vsyncpa [#allocation6], 1 }
 0x4bd   :  { %2296 = vsyncpa [#allocation6 + $0x1], 1 }

</bundles_post_ra>
